<compile_context>
chip_gen: v7x
topology: tpu7x:2x2x1
jax: 0.10.0
libtpu: 0.0.40
codegen_flags: <defaults>
</compile_context>

<pallas_src>
import math
from functools import partial

import jax
import jax.numpy as jnp
from jax.experimental import pallas as pl
from jax.experimental.pallas import tpu as pltpu


# ----------------------------- config ---------------------------------------
class GPTConfig:
    block_size: int = 16
    vocab_size: int = 128
    n_layer: int = 2
    n_head: int = 2
    n_embd: int = 32


# ----------------------------- math helpers ----------------------------------
def _layernorm(x, w, b, eps=1e-5):
    mu = jnp.mean(x, axis=-1, keepdims=True)
    var = jnp.mean((x - mu) ** 2, axis=-1, keepdims=True)
    return (x - mu) * jax.lax.rsqrt(var + eps) * w + b


def _gelu_tanh(x):
    # torch.nn.GELU(approximate='tanh')
    c = math.sqrt(2.0 / math.pi)
    return 0.5 * x * (1.0 + jnp.tanh(c * (x + 0.044715 * x * x * x)))


# ----------------------------- fused forward kernel --------------------------
def gpt_kernel(x_ref, wpe_ref,
               ln1_w, ln1_b, w_qkv, b_qkv, w_ap, b_ap,
               ln2_w, ln2_b, w_fc, b_fc, w_mp, b_mp,
               lnf_w, lnf_b, wte_t,
               logits_ref, acc_ref, *, n_head):
    """Grid = (B, L).  One batch row per outer step, one layer per inner step.

    The activation for the current batch row lives in `acc_ref` (VMEM) across
    all layer steps; logits are written only on the last layer step.
    """
    l = pl.program_id(1)
    n_layers = pl.num_programs(1)

    # layer 0: initialize resident activation = tok_emb + pos_emb (fused).
    @pl.when(l == 0)
    def _():
        acc_ref[...] = x_ref[0] + wpe_ref[...]

    x = acc_ref[...]                          # (T, C) float32, VMEM-resident
    T, C = x.shape
    H = n_head
    D = C // H
    scale = 1.0 / math.sqrt(D)

    # Causal mask: built once per grid step, shared by all heads.
    row = jax.lax.broadcasted_iota(jnp.int32, (T, T), 0)
    col = jax.lax.broadcasted_iota(jnp.int32, (T, T), 1)
    causal = (col <= row)[None, :, :]         # (1, T, T)

    # ---- attention branch ----------------------------------------------------
    h = _layernorm(x, ln1_w[0, 0], ln1_b[0, 0])
    qkv = jnp.dot(h.astype(jnp.bfloat16), w_qkv[0],
                  preferred_element_type=jnp.float32) + b_qkv[0, 0]

    def split_heads(m):                       # (T, C) -> (H, T, D)
        return m.reshape(T, H, D).swapaxes(0, 1)

    q = split_heads(qkv[:, 0 * C:1 * C]).astype(jnp.bfloat16)
    k = split_heads(qkv[:, 1 * C:2 * C]).astype(jnp.bfloat16)
    v = split_heads(qkv[:, 2 * C:3 * C]).astype(jnp.bfloat16)

    # All heads in one batched contraction; no explicit transpose of k.
    s = jnp.einsum('htd,hsd->hts', q, k,
                   preferred_element_type=jnp.float32) * scale
    s = jnp.where(causal, s, jnp.float32(-1e30))
    p = jnp.exp(s - jnp.max(s, axis=-1, keepdims=True))
    p = p * pl.reciprocal(jnp.sum(p, axis=-1, keepdims=True), approx=True)
    y = jnp.einsum('hts,hsd->htd', p.astype(jnp.bfloat16), v,
                   preferred_element_type=jnp.float32)
    y = y.swapaxes(0, 1).reshape(T, C)        # (T, C), matches torch head merge
    y = jnp.dot(y.astype(jnp.bfloat16), w_ap[0],
                preferred_element_type=jnp.float32) + b_ap[0, 0]
    x = x + y

    # ---- MLP branch ------------------------------------------------------------
    h2 = _layernorm(x, ln2_w[0, 0], ln2_b[0, 0])
    a = jnp.dot(h2.astype(jnp.bfloat16), w_fc[0],
                preferred_element_type=jnp.float32) + b_fc[0, 0]
    a = _gelu_tanh(a)
    m = jnp.dot(a.astype(jnp.bfloat16), w_mp[0],
                preferred_element_type=jnp.float32) + b_mp[0, 0]
    x = x + m

    acc_ref[...] = x

    # ---- final LayerNorm + tied lm_head on the last layer step ----------------
    @pl.when(l == n_layers - 1)
    def _():
        hf = _layernorm(x, lnf_w[0], lnf_b[0])
        logits_ref[0] = jnp.dot(hf.astype(jnp.bfloat16), wte_t[...],
                                preferred_element_type=jnp.float32
                                ).astype(logits_ref.dtype)


# ----------------------------- wrapper ---------------------------------------
def gpt_forward(idx, cfg, params):
    wte, wpe, stacked, lnf_w, lnf_b, wte_t = params
    B, T = idx.shape
    assert T <= cfg.block_size
    C, V, L = cfg.n_embd, cfg.vocab_size, cfg.n_layer

    # embedding lookup (gather) stays in plain JAX; pos-emb add is fused into
    # the kernel via the wpe input.
    tok_emb = jnp.take(wte, idx, axis=0)                   # (B, T, C) f32
    wpe_t = wpe[:T]                                        # (T, C)    f32

    layer_specs = [pl.BlockSpec((1,) + p.shape[1:], lambda b, l: (l, 0, 0))
                   for p in stacked]

    in_specs = ([pl.BlockSpec((1, T, C), lambda b, l: (b, 0, 0)),   # tok_emb
                 pl.BlockSpec((T, C), lambda b, l: (0, 0))]         # wpe[:T]
                + layer_specs
                + [pl.BlockSpec((1, C), lambda b, l: (0, 0)),       # lnf_w
                   pl.BlockSpec((1, C), lambda b, l: (0, 0)),       # lnf_b
                   pl.BlockSpec((C, V), lambda b, l: (0, 0))])      # wte.T

    return pl.pallas_call(
        partial(gpt_kernel, n_head=cfg.n_head),
        out_shape=jax.ShapeDtypeStruct((B, T, V), jnp.float32),
        grid_spec=pltpu.PrefetchScalarGridSpec(
            num_scalar_prefetch=0,
            grid=(B, L),
            in_specs=in_specs,
            out_specs=pl.BlockSpec((1, T, V), lambda b, l: (b, 0, 0)),
            scratch_shapes=[pltpu.VMEM((T, C), jnp.float32)],
        ),
        compiler_params=pltpu.CompilerParams(
            dimension_semantics=("parallel", "arbitrary")),
    )(tok_emb, wpe_t, *stacked, lnf_w, lnf_b, wte_t)


# ----------------------------- parameter init ---------------------------------
def init_params(cfg, key):
    C, V, L = cfg.n_embd, cfg.vocab_size, cfg.n_layer
    std = 0.02
    std_scaled = 0.02 * (2 * L) ** -0.5      # NANOGPT_SCALE_INIT for c_proj

    keys = jax.random.split(key, 2 + 4 * L)
    wte = std * jax.random.normal(keys[0], (V, C), jnp.float32)
    wpe = std * jax.random.normal(keys[1], (cfg.block_size, C), jnp.float32)

    w_qkv = jnp.stack([std * jax.random.normal(keys[2 + 4 * l], (C, 3 * C),
                                               jnp.float32) for l in range(L)])
    w_ap = jnp.stack([std_scaled * jax.random.normal(keys[3 + 4 * l], (C, C),
                                                     jnp.float32) for l in range(L)])
    w_fc = jnp.stack([std * jax.random.normal(keys[4 + 4 * l], (C, 4 * C),
                                              jnp.float32) for l in range(L)])
    w_mp = jnp.stack([std_scaled * jax.random.normal(keys[5 + 4 * l], (4 * C, C),
                                                     jnp.float32) for l in range(L)])

    stacked = (
        jnp.ones((L, 1, C), jnp.float32),          # ln1 weight
        jnp.zeros((L, 1, C), jnp.float32),         # ln1 bias
        w_qkv.astype(jnp.bfloat16),                # c_attn W   (bf16 MXU input)
        jnp.zeros((L, 1, 3 * C), jnp.float32),     # c_attn b
        w_ap.astype(jnp.bfloat16),                 # attn c_proj W
        jnp.zeros((L, 1, C), jnp.float32),         # attn c_proj b
        jnp.ones((L, 1, C), jnp.float32),          # ln2 weight
        jnp.zeros((L, 1, C), jnp.float32),         # ln2 bias
        w_fc.astype(jnp.bfloat16),                 # c_fc W
        jnp.zeros((L, 1, 4 * C), jnp.float32),     # c_fc b
        w_mp.astype(jnp.bfloat16),                 # mlp c_proj W
        jnp.zeros((L, 1, C), jnp.float32),         # mlp c_proj b
    )

    lnf_w = jnp.ones((1, C), jnp.float32)
    lnf_b = jnp.zeros((1, C), jnp.float32)
    wte_t = wte.T.astype(jnp.bfloat16)             # tied lm_head weight
    return wte, wpe, stacked, lnf_w, lnf_b, wte_t


# ----------------------------- pure-JAX reference ------------------------------
def gpt_reference(idx, cfg, params):
    wte, wpe, stacked, lnf_w, lnf_b, wte_t = params
    (ln1_w, ln1_b, w_qkv, b_qkv, w_ap, b_ap,
     ln2_w, ln2_b, w_fc, b_fc, w_mp, b_mp) = stacked
    B, T = idx.shape
    C, H = cfg.n_embd, cfg.n_head
    D = C // H
    f32 = jnp.float32

    x = jnp.take(wte, idx, axis=0) + wpe[:T][None]
    causal = jnp.tril(jnp.ones((T, T), bool))
    for l in range(cfg.n_layer):
        h = _layernorm(x, ln1_w[l, 0], ln1_b[l, 0])
        qkv = h @ w_qkv[l].astype(f32) + b_qkv[l, 0]
        q, k, v = jnp.split(qkv, 3, axis=-1)
        q = q.reshape(B, T, H, D).transpose(0, 2, 1, 3)
        k = k.reshape(B, T, H, D).transpose(0, 2, 1, 3)
        v = v.reshape(B, T, H, D).transpose(0, 2, 1, 3)
        s = (q @ k.transpose(0, 1, 3, 2)) / math.sqrt(D)
        s = jnp.where(causal, s, -jnp.inf)
        p = jax.nn.softmax(s, axis=-1)
        y = (p @ v).transpose(0, 2, 1, 3).reshape(B, T, C)
        y = y @ w_ap[l].astype(f32) + b_ap[l, 0]
        x = x + y
        h2 = _layernorm(x, ln2_w[l, 0], ln2_b[l, 0])
        a = _gelu_tanh(h2 @ w_fc[l].astype(f32) + b_fc[l, 0])
        x = x + a @ w_mp[l].astype(f32) + b_mp[l, 0]
    hf = _layernorm(x, lnf_w[0], lnf_b[0])
    return hf @ wte_t.astype(f32)


# ----------------------------- main --------------------------------------------
if __name__ == "__main__":
    cfg = GPTConfig()
    key = jax.random.PRNGKey(0)
    pkey, ikey = jax.random.split(key)

    params = init_params(cfg, pkey)

    B, T = 2, 8
    idx = jax.random.randint(ikey, (B, T), 0, cfg.vocab_size, dtype=jnp.int32)

    logits = gpt_forward(idx, cfg, params)
    logits = jax.block_until_ready(logits)

    assert logits.shape == (B, T, cfg.vocab_size)
    assert bool(jnp.all(jnp.isfinite(logits)))

    # Loose tolerance: kernel uses bf16 MXU inputs + approx reciprocal softmax.
    ref = gpt_reference(idx, cfg, params)
    assert bool(jnp.allclose(logits, ref, atol=5e-2, rtol=5e-2))

    # TODO(synk): cross-entropy loss path (targets) not implemented; forward returns logits only.
    print("KERNEL_OK")
</pallas_src>

<mosaic_0001>
module attributes {stable_mosaic.version = 11 : i64} {
  func.func @gpt_kernel(%arg0: i32, %arg1: i32, %arg2: memref<1x8x32xf32, #tpu.memory_space<vmem>>, %arg3: memref<8x32xf32, #tpu.memory_space<vmem>>, %arg4: memref<1x1x32xf32, #tpu.memory_space<vmem>>, %arg5: memref<1x1x32xf32, #tpu.memory_space<vmem>>, %arg6: memref<1x32x96xbf16, #tpu.memory_space<vmem>>, %arg7: memref<1x1x96xf32, #tpu.memory_space<vmem>>, %arg8: memref<1x32x32xbf16, #tpu.memory_space<vmem>>, %arg9: memref<1x1x32xf32, #tpu.memory_space<vmem>>, %arg10: memref<1x1x32xf32, #tpu.memory_space<vmem>>, %arg11: memref<1x1x32xf32, #tpu.memory_space<vmem>>, %arg12: memref<1x32x128xbf16, #tpu.memory_space<vmem>>, %arg13: memref<1x1x128xf32, #tpu.memory_space<vmem>>, %arg14: memref<1x128x32xbf16, #tpu.memory_space<vmem>>, %arg15: memref<1x1x32xf32, #tpu.memory_space<vmem>>, %arg16: memref<1x32xf32, #tpu.memory_space<vmem>>, %arg17: memref<1x32xf32, #tpu.memory_space<vmem>>, %arg18: memref<32x128xbf16, #tpu.memory_space<vmem>>, %arg19: memref<1x8x128xf32, #tpu.memory_space<vmem>>, %arg20: memref<8x32xf32, #tpu.memory_space<vmem>>) attributes {dimension_semantics = [#tpu.dimension_semantics<parallel>, #tpu.dimension_semantics<arbitrary>], iteration_bounds = array<i64: 2, 2>, scalar_prefetch = 0 : i64, scratch_operands = 1 : i64, tpu.core_type = #tpu.core_type<tc>, window_params = [{transform_indices = @transform_0, window_bounds = array<i64: 1, 8, 32>}, {pipeline_mode = #tpu.pipeline_mode<synchronous>, transform_indices = @transform_1, window_bounds = array<i64: 8, 32>}, {transform_indices = @transform_2, window_bounds = array<i64: 1, 1, 32>}, {transform_indices = @transform_3, window_bounds = array<i64: 1, 1, 32>}, {transform_indices = @transform_4, window_bounds = array<i64: 1, 32, 96>}, {transform_indices = @transform_5, window_bounds = array<i64: 1, 1, 96>}, {transform_indices = @transform_6, window_bounds = array<i64: 1, 32, 32>}, {transform_indices = @transform_7, window_bounds = array<i64: 1, 1, 32>}, {transform_indices = @transform_8, window_bounds = array<i64: 1, 1, 32>}, {transform_indices = @transform_9, window_bounds = array<i64: 1, 1, 32>}, {transform_indices = @transform_10, window_bounds = array<i64: 1, 32, 128>}, {transform_indices = @transform_11, window_bounds = array<i64: 1, 1, 128>}, {transform_indices = @transform_12, window_bounds = array<i64: 1, 128, 32>}, {transform_indices = @transform_13, window_bounds = array<i64: 1, 1, 32>}, {pipeline_mode = #tpu.pipeline_mode<synchronous>, transform_indices = @transform_14, window_bounds = array<i64: 1, 32>}, {pipeline_mode = #tpu.pipeline_mode<synchronous>, transform_indices = @transform_15, window_bounds = array<i64: 1, 32>}, {pipeline_mode = #tpu.pipeline_mode<synchronous>, transform_indices = @transform_16, window_bounds = array<i64: 32, 128>}, {transform_indices = @transform_17, window_bounds = array<i64: 1, 8, 128>}]} {
    %c0_i32 = arith.constant 0 : i32
    %0 = arith.cmpi eq, %arg1, %c0_i32 : i32
    %1 = arith.extui %0 : i1 to i32
    %c0_i32_0 = arith.constant 0 : i32
    %2 = arith.cmpi ne, %1, %c0_i32_0 : i32
    scf.if %2 {
      %c0_64 = arith.constant 0 : index
      %c0_65 = arith.constant 0 : index
      %c0_66 = arith.constant 0 : index
      %152 = vector.load %arg2[%c0_64, %c0_65, %c0_66] : memref<1x8x32xf32, #tpu.memory_space<vmem>>, vector<1x8x32xf32>
      %153 = vector.shape_cast %152 : vector<1x8x32xf32> to vector<8x32xf32>
      %c0_67 = arith.constant 0 : index
      %c0_68 = arith.constant 0 : index
      %154 = vector.load %arg3[%c0_67, %c0_68] : memref<8x32xf32, #tpu.memory_space<vmem>>, vector<8x32xf32>
      %155 = arith.addf %153, %154 : vector<8x32xf32>
      %c0_69 = arith.constant 0 : index
      %c0_70 = arith.constant 0 : index
      %156 = vector.load %arg20[%c0_69, %c0_70] : memref<8x32xf32, #tpu.memory_space<vmem>>, vector<8x32xf32>
      tpu.vector_store %arg20[%c0_69, %c0_70], %155 {strides = array<i32>} : memref<8x32xf32, #tpu.memory_space<vmem>>, vector<8x32xf32>,
    } else {
    }
    %c0 = arith.constant 0 : index
    %c0_1 = arith.constant 0 : index
    %3 = vector.load %arg20[%c0, %c0_1] : memref<8x32xf32, #tpu.memory_space<vmem>>, vector<8x32xf32>
    %4 = tpu.iota {dimensions = array<i32: 0>} : vector<8x8xi32>
    %5 = tpu.iota {dimensions = array<i32: 1>} : vector<8x8xi32>
    %6 = arith.cmpi sle, %5, %4 : vector<8x8xi32>
    %7 = vector.shape_cast %6 : vector<8x8xi1> to vector<1x8x8xi1>
    %c0_2 = arith.constant 0 : index
    %c0_3 = arith.constant 0 : index
    %c0_4 = arith.constant 0 : index
    %8 = vector.load %arg4[%c0_2, %c0_3, %c0_4] : memref<1x1x32xf32, #tpu.memory_space<vmem>>, vector<1x1x32xf32>
    %9 = vector.shape_cast %8 : vector<1x1x32xf32> to vector<32xf32>
    %c0_5 = arith.constant 0 : index
    %c0_6 = arith.constant 0 : index
    %c0_7 = arith.constant 0 : index
    %10 = vector.load %arg5[%c0_5, %c0_6, %c0_7] : memref<1x1x32xf32, #tpu.memory_space<vmem>>, vector<1x1x32xf32>
    %11 = vector.shape_cast %10 : vector<1x1x32xf32> to vector<32xf32>
    %cst = arith.constant dense<0.000000e+00> : vector<8xf32>
    %12 = vector.multi_reduction <add>, %3, %cst [1] : vector<8x32xf32> to vector<8xf32>
    %13 = vector.shape_cast %12 : vector<8xf32> to vector<8x1xf32>
    %cst_8 = arith.constant 3.200000e+01 : f32
    %14 = vector.broadcast %cst_8 : f32 to vector<8x1xf32>
    %15 = arith.divf %13, %14 : vector<8x1xf32>
    %16 = vector.broadcast %15 : vector<8x1xf32> to vector<8x32xf32>
    %17 = arith.subf %3, %16 : vector<8x32xf32>
    %18 = arith.mulf %17, %17 : vector<8x32xf32>
    %cst_9 = arith.constant dense<0.000000e+00> : vector<8xf32>
    %19 = vector.multi_reduction <add>, %18, %cst_9 [1] : vector<8x32xf32> to vector<8xf32>
    %20 = vector.shape_cast %19 : vector<8xf32> to vector<8x1xf32>
    %cst_10 = arith.constant 3.200000e+01 : f32
    %21 = vector.broadcast %cst_10 : f32 to vector<8x1xf32>
    %22 = arith.divf %20, %21 : vector<8x1xf32>
    %23 = vector.broadcast %15 : vector<8x1xf32> to vector<8x32xf32>
    %24 = arith.subf %3, %23 : vector<8x32xf32>
    %cst_11 = arith.constant 9.99999974E-6 : f32
    %25 = vector.broadcast %cst_11 : f32 to vector<8x1xf32>
    %26 = arith.addf %22, %25 : vector<8x1xf32>
    %27 = math.rsqrt %26 : vector<8x1xf32>
    %28 = vector.broadcast %27 : vector<8x1xf32> to vector<8x32xf32>
    %29 = arith.mulf %24, %28 : vector<8x32xf32>
    %30 = vector.shape_cast %9 : vector<32xf32> to vector<1x32xf32>
    %31 = vector.broadcast %30 : vector<1x32xf32> to vector<8x32xf32>
    %32 = arith.mulf %29, %31 : vector<8x32xf32>
    %33 = vector.shape_cast %11 : vector<32xf32> to vector<1x32xf32>
    %34 = vector.broadcast %33 : vector<1x32xf32> to vector<8x32xf32>
    %35 = arith.addf %32, %34 : vector<8x32xf32>
    %36 = arith.truncf %35 : vector<8x32xf32> to vector<8x32xbf16>
    %c0_12 = arith.constant 0 : index
    %c0_13 = arith.constant 0 : index
    %c0_14 = arith.constant 0 : index
    %37 = vector.load %arg6[%c0_12, %c0_13, %c0_14] : memref<1x32x96xbf16, #tpu.memory_space<vmem>>, vector<1x32x96xbf16>
    %38 = vector.shape_cast %37 : vector<1x32x96xbf16> to vector<32x96xbf16>
    %cst_15 = arith.constant dense<0.000000e+00> : vector<8x96xf32>
    %39 = tpu.matmul %36, %38, %cst_15 {dimension_numbers = #tpu.dot_dimension_numbers<[1], [0], [0], [1], [0, 0, 1, 1], [], []>} : vector<8x32xbf16>, vector<32x96xbf16>, vector<8x96xf32> -> vector<8x96xf32>
    %c0_16 = arith.constant 0 : index
    %c0_17 = arith.constant 0 : index
    %c0_18 = arith.constant 0 : index
    %40 = vector.load %arg7[%c0_16, %c0_17, %c0_18] : memref<1x1x96xf32, #tpu.memory_space<vmem>>, vector<1x1x96xf32>
    %41 = vector.shape_cast %40 : vector<1x1x96xf32> to vector<96xf32>
    %42 = vector.shape_cast %41 : vector<96xf32> to vector<1x96xf32>
    %43 = vector.broadcast %42 : vector<1x96xf32> to vector<8x96xf32>
    %44 = arith.addf %39, %43 : vector<8x96xf32>
    %45 = vector.extract_strided_slice %44 {offsets = [0, 0], sizes = [8, 32], strides = [1, 1]} : vector<8x96xf32> to vector<8x32xf32>
    %46 = vector.shape_cast %45 : vector<8x32xf32> to vector<8x2x16xf32>
    %47 = tpu.transpose %46, [1, 0, 2] : vector<8x2x16xf32> -> vector<2x8x16xf32>
    %48 = arith.truncf %47 : vector<2x8x16xf32> to vector<2x8x16xbf16>
    %49 = vector.extract_strided_slice %44 {offsets = [0, 32], sizes = [8, 32], strides = [1, 1]} : vector<8x96xf32> to vector<8x32xf32>
    %50 = vector.shape_cast %49 : vector<8x32xf32> to vector<8x2x16xf32>
    %51 = tpu.transpose %50, [1, 0, 2] : vector<8x2x16xf32> -> vector<2x8x16xf32>
    %52 = arith.truncf %51 : vector<2x8x16xf32> to vector<2x8x16xbf16>
    %53 = vector.extract_strided_slice %44 {offsets = [0, 64], sizes = [8, 32], strides = [1, 1]} : vector<8x96xf32> to vector<8x32xf32>
    %54 = vector.shape_cast %53 : vector<8x32xf32> to vector<8x2x16xf32>
    %55 = tpu.transpose %54, [1, 0, 2] : vector<8x2x16xf32> -> vector<2x8x16xf32>
    %56 = arith.truncf %55 : vector<2x8x16xf32> to vector<2x8x16xbf16>
    "tpu.trace_start"() <{level = 10 : i32, message = "htd,hsd->hts"}> : () -> ()
    %cst_19 = arith.constant dense<0.000000e+00> : vector<2x8x8xf32>
    %57 = tpu.matmul %48, %52, %cst_19 {dimension_numbers = #tpu.dot_dimension_numbers<[2], [2], [1], [1], [0, 0, 0, 1, 1, 1], [0], [0]>} : vector<2x8x16xbf16>, vector<2x8x16xbf16>, vector<2x8x8xf32> -> vector<2x8x8xf32>
    "tpu.trace_stop"() : () -> ()
    %cst_20 = arith.constant 2.500000e-01 : f32
    %58 = vector.broadcast %cst_20 : f32 to vector<2x8x8xf32>
    %59 = arith.mulf %57, %58 : vector<2x8x8xf32>
    %cst_21 = arith.constant -1.000000e+30 : f32
    %60 = vector.shape_cast %7 : vector<1x8x8xi1> to vector<1x8x8xi1>
    %61 = vector.broadcast %60 : vector<1x8x8xi1> to vector<2x8x8xi1>
    %62 = vector.broadcast %cst_21 : f32 to vector<2x8x8xf32>
    %63 = arith.select %61, %59, %62 : vector<2x8x8xi1>, vector<2x8x8xf32>
    %cst_22 = arith.constant dense<0xFF800000> : vector<2x8xf32>
    %64 = vector.multi_reduction <maximumf>, %63, %cst_22 [2] : vector<2x8x8xf32> to vector<2x8xf32>
    %65 = vector.shape_cast %64 : vector<2x8xf32> to vector<2x8x1xf32>
    %66 = vector.broadcast %65 : vector<2x8x1xf32> to vector<2x8x8xf32>
    %67 = arith.subf %63, %66 : vector<2x8x8xf32>
    %68 = math.exp %67 : vector<2x8x8xf32>
    %cst_23 = arith.constant dense<0.000000e+00> : vector<2x8xf32>
    %69 = vector.multi_reduction <add>, %68, %cst_23 [2] : vector<2x8x8xf32> to vector<2x8xf32>
    %70 = vector.shape_cast %69 : vector<2x8xf32> to vector<2x8x1xf32>
    %71 = tpu.reciprocal %70 {approx = true} : vector<2x8x1xf32> -> vector<2x8x1xf32>
    %72 = vector.broadcast %71 : vector<2x8x1xf32> to vector<2x8x8xf32>
    %73 = arith.mulf %68, %72 : vector<2x8x8xf32>
    %74 = arith.truncf %73 : vector<2x8x8xf32> to vector<2x8x8xbf16>
    "tpu.trace_start"() <{level = 10 : i32, message = "hts,hsd->htd"}> : () -> ()
    %cst_24 = arith.constant dense<0.000000e+00> : vector<2x8x16xf32>
    %75 = tpu.matmul %74, %56, %cst_24 {dimension_numbers = #tpu.dot_dimension_numbers<[2], [1], [1], [2], [0, 0, 0, 1, 1, 2], [0], [0]>} : vector<2x8x8xbf16>, vector<2x8x16xbf16>, vector<2x8x16xf32> -> vector<2x8x16xf32>
    "tpu.trace_stop"() : () -> ()
    %76 = tpu.transpose %75, [1, 0, 2] : vector<2x8x16xf32> -> vector<8x2x16xf32>
    %77 = vector.shape_cast %76 : vector<8x2x16xf32> to vector<8x32xf32>
    %78 = arith.truncf %77 : vector<8x32xf32> to vector<8x32xbf16>
    %c0_25 = arith.constant 0 : index
    %c0_26 = arith.constant 0 : index
    %c0_27 = arith.constant 0 : index
    %79 = vector.load %arg8[%c0_25, %c0_26, %c0_27] : memref<1x32x32xbf16, #tpu.memory_space<vmem>>, vector<1x32x32xbf16>
    %80 = vector.shape_cast %79 : vector<1x32x32xbf16> to vector<32x32xbf16>
    %cst_28 = arith.constant dense<0.000000e+00> : vector<8x32xf32>
    %81 = tpu.matmul %78, %80, %cst_28 {dimension_numbers = #tpu.dot_dimension_numbers<[1], [0], [0], [1], [0, 0, 1, 1], [], []>} : vector<8x32xbf16>, vector<32x32xbf16>, vector<8x32xf32> -> vector<8x32xf32>
    %c0_29 = arith.constant 0 : index
    %c0_30 = arith.constant 0 : index
    %c0_31 = arith.constant 0 : index
    %82 = vector.load %arg9[%c0_29, %c0_30, %c0_31] : memref<1x1x32xf32, #tpu.memory_space<vmem>>, vector<1x1x32xf32>
    %83 = vector.shape_cast %82 : vector<1x1x32xf32> to vector<32xf32>
    %84 = vector.shape_cast %83 : vector<32xf32> to vector<1x32xf32>
    %85 = vector.broadcast %84 : vector<1x32xf32> to vector<8x32xf32>
    %86 = arith.addf %81, %85 : vector<8x32xf32>
    %87 = arith.addf %3, %86 : vector<8x32xf32>
    %c0_32 = arith.constant 0 : index
    %c0_33 = arith.constant 0 : index
    %c0_34 = arith.constant 0 : index
    %88 = vector.load %arg10[%c0_32, %c0_33, %c0_34] : memref<1x1x32xf32, #tpu.memory_space<vmem>>, vector<1x1x32xf32>
    %89 = vector.shape_cast %88 : vector<1x1x32xf32> to vector<32xf32>
    %c0_35 = arith.constant 0 : index
    %c0_36 = arith.constant 0 : index
    %c0_37 = arith.constant 0 : index
    %90 = vector.load %arg11[%c0_35, %c0_36, %c0_37] : memref<1x1x32xf32, #tpu.memory_space<vmem>>, vector<1x1x32xf32>
    %91 = vector.shape_cast %90 : vector<1x1x32xf32> to vector<32xf32>
    %cst_38 = arith.constant dense<0.000000e+00> : vector<8xf32>
    %92 = vector.multi_reduction <add>, %87, %cst_38 [1] : vector<8x32xf32> to vector<8xf32>
    %93 = vector.shape_cast %92 : vector<8xf32> to vector<8x1xf32>
    %cst_39 = arith.constant 3.200000e+01 : f32
    %94 = vector.broadcast %cst_39 : f32 to vector<8x1xf32>
    %95 = arith.divf %93, %94 : vector<8x1xf32>
    %96 = vector.broadcast %95 : vector<8x1xf32> to vector<8x32xf32>
    %97 = arith.subf %87, %96 : vector<8x32xf32>
    %98 = arith.mulf %97, %97 : vector<8x32xf32>
    %cst_40 = arith.constant dense<0.000000e+00> : vector<8xf32>
    %99 = vector.multi_reduction <add>, %98, %cst_40 [1] : vector<8x32xf32> to vector<8xf32>
    %100 = vector.shape_cast %99 : vector<8xf32> to vector<8x1xf32>
    %cst_41 = arith.constant 3.200000e+01 : f32
    %101 = vector.broadcast %cst_41 : f32 to vector<8x1xf32>
    %102 = arith.divf %100, %101 : vector<8x1xf32>
    %103 = vector.broadcast %95 : vector<8x1xf32> to vector<8x32xf32>
    %104 = arith.subf %87, %103 : vector<8x32xf32>
    %cst_42 = arith.constant 9.99999974E-6 : f32
    %105 = vector.broadcast %cst_42 : f32 to vector<8x1xf32>
    %106 = arith.addf %102, %105 : vector<8x1xf32>
    %107 = math.rsqrt %106 : vector<8x1xf32>
    %108 = vector.broadcast %107 : vector<8x1xf32> to vector<8x32xf32>
    %109 = arith.mulf %104, %108 : vector<8x32xf32>
    %110 = vector.shape_cast %89 : vector<32xf32> to vector<1x32xf32>
    %111 = vector.broadcast %110 : vector<1x32xf32> to vector<8x32xf32>
    %112 = arith.mulf %109, %111 : vector<8x32xf32>
    %113 = vector.shape_cast %91 : vector<32xf32> to vector<1x32xf32>
    %114 = vector.broadcast %113 : vector<1x32xf32> to vector<8x32xf32>
    %115 = arith.addf %112, %114 : vector<8x32xf32>
    %116 = arith.truncf %115 : vector<8x32xf32> to vector<8x32xbf16>
    %c0_43 = arith.constant 0 : index
    %c0_44 = arith.constant 0 : index
    %c0_45 = arith.constant 0 : index
    %117 = vector.load %arg12[%c0_43, %c0_44, %c0_45] : memref<1x32x128xbf16, #tpu.memory_space<vmem>>, vector<1x32x128xbf16>
    %118 = vector.shape_cast %117 : vector<1x32x128xbf16> to vector<32x128xbf16>
    %cst_46 = arith.constant dense<0.000000e+00> : vector<8x128xf32>
    %119 = tpu.matmul %116, %118, %cst_46 {dimension_numbers = #tpu.dot_dimension_numbers<[1], [0], [0], [1], [0, 0, 1, 1], [], []>} : vector<8x32xbf16>, vector<32x128xbf16>, vector<8x128xf32> -> vector<8x128xf32>
    %c0_47 = arith.constant 0 : index
    %c0_48 = arith.constant 0 : index
    %c0_49 = arith.constant 0 : index
    %120 = vector.load %arg13[%c0_47, %c0_48, %c0_49] : memref<1x1x128xf32, #tpu.memory_space<vmem>>, vector<1x1x128xf32>
    %121 = vector.shape_cast %120 : vector<1x1x128xf32> to vector<128xf32>
    %122 = vector.shape_cast %121 : vector<128xf32> to vector<1x128xf32>
    %123 = vector.broadcast %122 : vector<1x128xf32> to vector<8x128xf32>
    %124 = arith.addf %119, %123 : vector<8x128xf32>
    %cst_50 = arith.constant 5.000000e-01 : f32
    %125 = vector.broadcast %cst_50 : f32 to vector<8x128xf32>
    %126 = arith.mulf %125, %124 : vector<8x128xf32>
    %cst_51 = arith.constant 4.471500e-02 : f32
    %127 = vector.broadcast %cst_51 : f32 to vector<8x128xf32>
    %128 = arith.mulf %127, %124 : vector<8x128xf32>
    %129 = arith.mulf %128, %124 : vector<8x128xf32>
    %130 = arith.mulf %129, %124 : vector<8x128xf32>
    %131 = arith.addf %124, %130 : vector<8x128xf32>
    %cst_52 = arith.constant 0.797884583 : f32
    %132 = vector.broadcast %cst_52 : f32 to vector<8x128xf32>
    %133 = arith.mulf %132, %131 : vector<8x128xf32>
    %134 = math.tanh %133 : vector<8x128xf32>
    %cst_53 = arith.constant 1.000000e+00 : f32
    %135 = vector.broadcast %cst_53 : f32 to vector<8x128xf32>
    %136 = arith.addf %135, %134 : vector<8x128xf32>
    %137 = arith.mulf %126, %136 : vector<8x128xf32>
    %138 = arith.truncf %137 : vector<8x128xf32> to vector<8x128xbf16>
    %c0_54 = arith.constant 0 : index
    %c0_55 = arith.constant 0 : index
    %c0_56 = arith.constant 0 : index
    %139 = vector.load %arg14[%c0_54, %c0_55, %c0_56] : memref<1x128x32xbf16, #tpu.memory_space<vmem>>, vector<1x128x32xbf16>
    %140 = vector.shape_cast %139 : vector<1x128x32xbf16> to vector<128x32xbf16>
    %cst_57 = arith.constant dense<0.000000e+00> : vector<8x32xf32>
    %141 = tpu.matmul %138, %140, %cst_57 {dimension_numbers = #tpu.dot_dimension_numbers<[1], [0], [0], [1], [0, 0, 1, 1], [], []>} : vector<8x128xbf16>, vector<128x32xbf16>, vector<8x32xf32> -> vector<8x32xf32>
    %c0_58 = arith.constant 0 : index
    %c0_59 = arith.constant 0 : index
    %c0_60 = arith.constant 0 : index
    %142 = vector.load %arg15[%c0_58, %c0_59, %c0_60] : memref<1x1x32xf32, #tpu.memory_space<vmem>>, vector<1x1x32xf32>
    %143 = vector.shape_cast %142 : vector<1x1x32xf32> to vector<32xf32>
    %144 = vector.shape_cast %143 : vector<32xf32> to vector<1x32xf32>
    %145 = vector.broadcast %144 : vector<1x32xf32> to vector<8x32xf32>
    %146 = arith.addf %141, %145 : vector<8x32xf32>
    %147 = arith.addf %87, %146 : vector<8x32xf32>
    %c0_61 = arith.constant 0 : index
    %c0_62 = arith.constant 0 : index
    %148 = vector.load %arg20[%c0_61, %c0_62] : memref<8x32xf32, #tpu.memory_space<vmem>>, vector<8x32xf32>
    tpu.vector_store %arg20[%c0_61, %c0_62], %147 {strides = array<i32>} : memref<8x32xf32, #tpu.memory_space<vmem>>, vector<8x32xf32>,
    %c1_i32 = arith.constant 1 : i32
    %149 = arith.cmpi eq, %arg1, %c1_i32 : i32
    %150 = arith.extui %149 : i1 to i32
    %c0_i32_63 = arith.constant 0 : i32
    %151 = arith.cmpi ne, %150, %c0_i32_63 : i32
    scf.if %151 {
      %c0_64 = arith.constant 0 : index
      %c0_65 = arith.constant 0 : index
      %152 = vector.load %arg16[%c0_64, %c0_65] : memref<1x32xf32, #tpu.memory_space<vmem>>, vector<1x32xf32>
      %153 = vector.shape_cast %152 : vector<1x32xf32> to vector<32xf32>
      %c0_66 = arith.constant 0 : index
      %c0_67 = arith.constant 0 : index
      %154 = vector.load %arg17[%c0_66, %c0_67] : memref<1x32xf32, #tpu.memory_space<vmem>>, vector<1x32xf32>
      %155 = vector.shape_cast %154 : vector<1x32xf32> to vector<32xf32>
      %cst_68 = arith.constant dense<0.000000e+00> : vector<8xf32>
      %156 = vector.multi_reduction <add>, %147, %cst_68 [1] : vector<8x32xf32> to vector<8xf32>
      %157 = vector.shape_cast %156 : vector<8xf32> to vector<8x1xf32>
      %cst_69 = arith.constant 3.200000e+01 : f32
      %158 = vector.broadcast %cst_69 : f32 to vector<8x1xf32>
      %159 = arith.divf %157, %158 : vector<8x1xf32>
      %160 = vector.broadcast %159 : vector<8x1xf32> to vector<8x32xf32>
      %161 = arith.subf %147, %160 : vector<8x32xf32>
      %162 = arith.mulf %161, %161 : vector<8x32xf32>
      %cst_70 = arith.constant dense<0.000000e+00> : vector<8xf32>
      %163 = vector.multi_reduction <add>, %162, %cst_70 [1] : vector<8x32xf32> to vector<8xf32>
      %164 = vector.shape_cast %163 : vector<8xf32> to vector<8x1xf32>
      %cst_71 = arith.constant 3.200000e+01 : f32
      %165 = vector.broadcast %cst_71 : f32 to vector<8x1xf32>
      %166 = arith.divf %164, %165 : vector<8x1xf32>
      %167 = vector.broadcast %159 : vector<8x1xf32> to vector<8x32xf32>
      %168 = arith.subf %147, %167 : vector<8x32xf32>
      %cst_72 = arith.constant 9.99999974E-6 : f32
      %169 = vector.broadcast %cst_72 : f32 to vector<8x1xf32>
      %170 = arith.addf %166, %169 : vector<8x1xf32>
      %171 = math.rsqrt %170 : vector<8x1xf32>
      %172 = vector.broadcast %171 : vector<8x1xf32> to vector<8x32xf32>
      %173 = arith.mulf %168, %172 : vector<8x32xf32>
      %174 = vector.shape_cast %153 : vector<32xf32> to vector<1x32xf32>
      %175 = vector.broadcast %174 : vector<1x32xf32> to vector<8x32xf32>
      %176 = arith.mulf %173, %175 : vector<8x32xf32>
      %177 = vector.shape_cast %155 : vector<32xf32> to vector<1x32xf32>
      %178 = vector.broadcast %177 : vector<1x32xf32> to vector<8x32xf32>
      %179 = arith.addf %176, %178 : vector<8x32xf32>
      %180 = arith.truncf %179 : vector<8x32xf32> to vector<8x32xbf16>
      %c0_73 = arith.constant 0 : index
      %c0_74 = arith.constant 0 : index
      %181 = vector.load %arg18[%c0_73, %c0_74] : memref<32x128xbf16, #tpu.memory_space<vmem>>, vector<32x128xbf16>
      %cst_75 = arith.constant dense<0.000000e+00> : vector<8x128xf32>
      %182 = tpu.matmul %180, %181, %cst_75 {dimension_numbers = #tpu.dot_dimension_numbers<[1], [0], [0], [1], [0, 0, 1, 1], [], []>} : vector<8x32xbf16>, vector<32x128xbf16>, vector<8x128xf32> -> vector<8x128xf32>
      %c0_76 = arith.constant 0 : index
      %c0_77 = arith.constant 0 : index
      %c0_78 = arith.constant 0 : index
      %183 = vector.load %arg19[%c0_76, %c0_77, %c0_78] : memref<1x8x128xf32, #tpu.memory_space<vmem>>, vector<1x8x128xf32>
      %184 = vector.shape_cast %183 : vector<1x8x128xf32> to vector<8x128xf32>
      %185 = vector.shape_cast %182 : vector<8x128xf32> to vector<1x8x128xf32>
      tpu.vector_store %arg19[%c0_76, %c0_77, %c0_78], %185 {strides = array<i32>} : memref<1x8x128xf32, #tpu.memory_space<vmem>>, vector<1x8x128xf32>,
    } else {
    }
    return
  }
  func.func @transform_0(%arg0: i32, %arg1: i32) -> (i32, i32, i32) {
    %c0_i32 = arith.constant 0 : i32
    %c0_i32_0 = arith.constant 0 : i32
    %c0_i32_1 = arith.constant 0 : i32
    return %arg0, %c0_i32, %c0_i32_0 : i32, i32, i32
  }
  func.func @transform_1(%arg0: i32, %arg1: i32) -> (i32, i32) {
    %c0_i32 = arith.constant 0 : i32
    %c0_i32_0 = arith.constant 0 : i32
    %c0_i32_1 = arith.constant 0 : i32
    return %c0_i32, %c0_i32_0 : i32, i32
  }
  func.func @transform_2(%arg0: i32, %arg1: i32) -> (i32, i32, i32) {
    %c0_i32 = arith.constant 0 : i32
    %c0_i32_0 = arith.constant 0 : i32
    %c0_i32_1 = arith.constant 0 : i32
    return %arg1, %c0_i32, %c0_i32_0 : i32, i32, i32
  }
  func.func @transform_3(%arg0: i32, %arg1: i32) -> (i32, i32, i32) {
    %c0_i32 = arith.constant 0 : i32
    %c0_i32_0 = arith.constant 0 : i32
    %c0_i32_1 = arith.constant 0 : i32
    return %arg1, %c0_i32, %c0_i32_0 : i32, i32, i32
  }
  func.func @transform_4(%arg0: i32, %arg1: i32) -> (i32, i32, i32) {
    %c0_i32 = arith.constant 0 : i32
    %c0_i32_0 = arith.constant 0 : i32
    %c0_i32_1 = arith.constant 0 : i32
    return %arg1, %c0_i32, %c0_i32_0 : i32, i32, i32
  }
  func.func @transform_5(%arg0: i32, %arg1: i32) -> (i32, i32, i32) {
    %c0_i32 = arith.constant 0 : i32
    %c0_i32_0 = arith.constant 0 : i32
    %c0_i32_1 = arith.constant 0 : i32
    return %arg1, %c0_i32, %c0_i32_0 : i32, i32, i32
  }
  func.func @transform_6(%arg0: i32, %arg1: i32) -> (i32, i32, i32) {
    %c0_i32 = arith.constant 0 : i32
    %c0_i32_0 = arith.constant 0 : i32
    %c0_i32_1 = arith.constant 0 : i32
    return %arg1, %c0_i32, %c0_i32_0 : i32, i32, i32
  }
  func.func @transform_7(%arg0: i32, %arg1: i32) -> (i32, i32, i32) {
    %c0_i32 = arith.constant 0 : i32
    %c0_i32_0 = arith.constant 0 : i32
    %c0_i32_1 = arith.constant 0 : i32
    return %arg1, %c0_i32, %c0_i32_0 : i32, i32, i32
  }
  func.func @transform_8(%arg0: i32, %arg1: i32) -> (i32, i32, i32) {
    %c0_i32 = arith.constant 0 : i32
    %c0_i32_0 = arith.constant 0 : i32
    %c0_i32_1 = arith.constant 0 : i32
    return %arg1, %c0_i32, %c0_i32_0 : i32, i32, i32
  }
  func.func @transform_9(%arg0: i32, %arg1: i32) -> (i32, i32, i32) {
    %c0_i32 = arith.constant 0 : i32
    %c0_i32_0 = arith.constant 0 : i32
    %c0_i32_1 = arith.constant 0 : i32
    return %arg1, %c0_i32, %c0_i32_0 : i32, i32, i32
  }
  func.func @transform_10(%arg0: i32, %arg1: i32) -> (i32, i32, i32) {
    %c0_i32 = arith.constant 0 : i32
    %c0_i32_0 = arith.constant 0 : i32
    %c0_i32_1 = arith.constant 0 : i32
    return %arg1, %c0_i32, %c0_i32_0 : i32, i32, i32
  }
  func.func @transform_11(%arg0: i32, %arg1: i32) -> (i32, i32, i32) {
    %c0_i32 = arith.constant 0 : i32
    %c0_i32_0 = arith.constant 0 : i32
    %c0_i32_1 = arith.constant 0 : i32
    return %arg1, %c0_i32, %c0_i32_0 : i32, i32, i32
  }
  func.func @transform_12(%arg0: i32, %arg1: i32) -> (i32, i32, i32) {
    %c0_i32 = arith.constant 0 : i32
    %c0_i32_0 = arith.constant 0 : i32
    %c0_i32_1 = arith.constant 0 : i32
    return %arg1, %c0_i32, %c0_i32_0 : i32, i32, i32
  }
  func.func @transform_13(%arg0: i32, %arg1: i32) -> (i32, i32, i32) {
    %c0_i32 = arith.constant 0 : i32
    %c0_i32_0 = arith.constant 0 : i32
    %c0_i32_1 = arith.constant 0 : i32
    return %arg1, %c0_i32, %c0_i32_0 : i32, i32, i32
  }
  func.func @transform_14(%arg0: i32, %arg1: i32) -> (i32, i32) {
    %c0_i32 = arith.constant 0 : i32
    %c0_i32_0 = arith.constant 0 : i32
    %c0_i32_1 = arith.constant 0 : i32
    return %c0_i32, %c0_i32_0 : i32, i32
  }
  func.func @transform_15(%arg0: i32, %arg1: i32) -> (i32, i32) {
    %c0_i32 = arith.constant 0 : i32
    %c0_i32_0 = arith.constant 0 : i32
    %c0_i32_1 = arith.constant 0 : i32
    return %c0_i32, %c0_i32_0 : i32, i32
  }
  func.func @transform_16(%arg0: i32, %arg1: i32) -> (i32, i32) {
    %c0_i32 = arith.constant 0 : i32
    %c0_i32_0 = arith.constant 0 : i32
    %c0_i32_1 = arith.constant 0 : i32
    return %c0_i32, %c0_i32_0 : i32, i32
  }
  func.func @transform_17(%arg0: i32, %arg1: i32) -> (i32, i32, i32) {
    %c0_i32 = arith.constant 0 : i32
    %c0_i32_0 = arith.constant 0 : i32
    %c0_i32_1 = arith.constant 0 : i32
    return %arg0, %c0_i32, %c0_i32_0 : i32, i32, i32
  }
}

</mosaic_0001>

<bundles_post_ra>
// kernel: tpu_custom_call.1
= control target key start
LH: loop header
LB: loop body
LE: loop exit
PB: predicated region body
PF: predicated region fallthrough
CT: control target
= control target key end

     0   :  { %s3057_s0 = inlined_call_operand.vmem [shape: f32[2,8,32], index: 0, kind: input, shape index: {}]   ;;  %s3058_s1 = inlined_call_operand.vmem [shape: f32[8,32], index: 1, kind: input, shape index: {}]   ;;  %s3059_s2 = inlined_call_operand.vmem [shape: f32[2,1,32], index: 2, kind: input, shape index: {}]   ;;  %s3060_s3 = inlined_call_operand.vmem [shape: f32[2,1,32], index: 3, kind: input, shape index: {}]   ;;  %s3061_s4 = inlined_call_operand.vmem [shape: bf16[2,32,96], index: 4, kind: input, shape index: {}]   ;;  %s3062_s5 = inlined_call_operand.vmem [shape: f32[2,1,96], index: 5, kind: input, shape index: {}]   ;;  %s3063_s6 = inlined_call_operand.vmem [shape: bf16[2,32,32], index: 6, kind: input, shape index: {}]   ;;  %s3064_s7 = inlined_call_operand.vmem [shape: f32[2,1,32], index: 7, kind: input, shape index: {}]   ;;  %s3065_s8 = inlined_call_operand.vmem [shape: f32[2,1,32], index: 8, kind: input, shape index: {}]   ;;  %s3066_s9 = inlined_call_operand.vmem [shape: f32[2,1,32], index: 9, kind: input, shape index: {}]   ;;  %s3067_s10 = inlined_call_operand.vmem [shape: bf16[2,32,128], index: 10, kind: input, shape index: {}]   ;;  %s3068_s11 = inlined_call_operand.vmem [shape: f32[2,1,128], index: 11, kind: input, shape index: {}]   ;;  %s3069_s12 = inlined_call_operand.vmem [shape: bf16[2,128,32], index: 12, kind: input, shape index: {}]   ;;  %s3070_s13 = inlined_call_operand.vmem [shape: f32[2,1,32], index: 13, kind: input, shape index: {}]   ;;  %s3071_s14 = inlined_call_operand.vmem [shape: f32[1,32], index: 14, kind: input, shape index: {}]   ;;  %s3072_s15 = inlined_call_operand.vmem [shape: f32[1,32], index: 15, kind: input, shape index: {}]   ;;  %s3073_s16 = inlined_call_operand.vmem [shape: bf16[32,128], index: 16, kind: input, shape index: {}]   ;;  %s3074_s17 = inlined_call_operand.hbm [shape: f32[2,8,128], index: 17, kind: output, shape index: {}]  }
   0x1   :  { %3091 = sst [smem:[#allocation19_spill]] %s3057_s0 }
   0x2   :  { %3092 = sst [smem:[#allocation20_spill]] %s3058_s1 }
   0x3   :  { %3093 = sst [smem:[#allocation21_spill]] %s3060_s3 }
   0x4   :  { %3094 = sst [smem:[#allocation22_spill]] %s3061_s4 }
   0x5   :  { %3095 = sst [smem:[#allocation23_spill]] %s3063_s6 }
   0x6   :  { %3096 = sst [smem:[#allocation24_spill]] %s3071_s14 }
   0x7   :  { %3097 = sst [smem:[#allocation25_spill]] %s3072_s15 }
   0x8   :  { %3098 = sst [smem:[#allocation26_spill]] %s3073_s16 }
   0x9   :  { %3099 = sst [smem:[#allocation27_spill]] %s3074_s17 }
   0xa   :  { %22 = vsyncpa [#allocation4], 0 }
   0xb   :  { %24 = vsyncpa [#allocation4 + $0x1], 0  ;;  %s2637_s24 = smov 0   ;;  %s2639_s25 = smov 0  }
   0xc   :  { %s2641_s26 = smov 0   ;;  %s2643_s27 = smov 0  }
   0xd   :  { %s2645_s28 = smov 0   ;;  %s2647_s29 = smov 0  }
   0xe   :  { %s2649_s0 = smov 0   ;;  %s2651_s30 = smov 0  }
   0xf LB: > { %3100 = sst [smem:[#allocation6_spill]] %s2506_s24  ;;  %s2155_s18 = sadd.s32 4294967295, %s2534_s30   ;;  %s2534_s30 = sphi %s2651_s30, %s30_s30   ;;  %s2530_s0 = sphi %s2649_s0, %s3146_s0   ;;  %s2526_s29 = sphi %s2647_s29, %s3145_s29   ;;  %s2522_s28 = sphi %s2645_s28, %s3144_s28   ;;  %s2518_s27 = sphi %s2643_s27, %s3143_s27   ;;  %s2514_s26 = sphi %s2641_s26, %s3142_s26   ;;  %s2510_s25 = sphi %s2639_s25, %s3141_s25   ;;  %s2506_s24 = sphi %s2637_s24, %s3140_s24  }
  0x10   : > { %3101 = sst [smem:[#allocation7_spill]] %s2510_s25  ;;  %s2156_s19 = sadd.s32 4294967294, %s2534_s30  }
  0x11   : > { %3102 = sst [smem:[#allocation8_spill]] %s2514_s26  ;;  %s39_s1 = sadd.s32 1, %s2526_s29 }
  0x12   : > { %3103 = sst [smem:[#allocation9_spill]] %s2518_s27  ;;  %p40_p0 = scmp.ge.s32.totalorder %s39_s1, 2 }
  0x13   : > { %3104 = sst [smem:[#allocation10_spill]] %s2522_s28  ;;  %s42_s20 = sadd.s32 1, %s2530_s0 }
  0x14   : > { %3105 = sst [smem:[#allocation11_spill]] %s2526_s29  ;;  %p481_p1 = scmp.ne.s32.totalorder %s2514_s26, %s2510_s25 }
  0x15   : > { %3106 = sst [smem:[#allocation12_spill]] %s2530_s0  ;;  %p482_p2 = scmp.eq.s32.totalorder %s2155_s18, 3 }
  0x16   : > { %3107 = sst [smem:[#allocation13_spill]] %s2534_s30  ;;  %s3148_s1 = smov (%p40_p0, %s39_s1), 0 }
  0x17   : > { %3108 = sst [smem:[#allocation14_spill]] %s3148_s1  ;;  %s3150_s20 = smov (!%p40_p0, %s42_s20), %s2530_s0 }
  0x18   : > { %p2686_p3 = por %p482_p2, %p481_p1  ;;  %p487_p4 = scmp.ne.s32.totalorder %s2510_s25, %s2506_s24 }
  0x19   : > { %p44_p5 = scmp.ge.s32.totalorder %s3150_s20, 2  ;;  %p488_p6 = scmp.eq.s32.totalorder %s2156_s19, 3 }
  0x1a   : > { %s3109_s21 = scalar_select %p2686_p3, 1, 0 }
  0x1b   : > { %p2159_p7 = scmp.ge.s32.totalorder %s2534_s30, 1  ;;  %p605_p8 = scmp.lt.s32.totalorder %s2534_s30, 5 }
  0x1c   : > { %3110 = sst [smem:[#allocation15_spill]] %s3109_s21  ;;  %s3152_s20 = smov (%p44_p5, %s3150_s20), 0 }
  0x1d   : > { %3111 = sst [smem:[#allocation16_spill]] %s3152_s20  ;;  %p2696_p9 = por %p488_p6, %p487_p4 }
  0x1e   : > { %p606_p10 = pnand %p2159_p7, %p605_p8  ;;  %s468_s23 = ssub.s32 %s2530_s0, %s3152_s20 }
  0x1f   : > { %s3112_s22 = scalar_select %p2696_p9, 1, 0 }
  0x20   : > { %s471_s18 = sadd.s32 1, %s2514_s26  ;;  %p469_p11 = scmp.eq.s32.totalorder %s468_s23, 0 }
  0x21   : > { %3113 = sst [smem:[#allocation17_spill]] %s3112_s22  ;;  %609 = sbr.rel (%p606_p10) target bundleno = 3297 (0xce1), region = 88 }
  0x22   : > { %s2704_s1 = scalar_select %p469_p11, %s2514_s26, %s471_s18  }
  0x23   : > { %s3080_s19 = sand.u32 (!%p606_p10), 1, %s2510_s25   ;;  %p700_p12 = scmp.lt.s32.totalorder (!%p606_p10), %s2522_s28, 1 }
  0x24   : > { %3114 = sst [smem:[#allocation18_spill]] %s2704_s1  ;;  %s2710_s29 = sshll.u32 (!%p606_p10), %s3080_s19, 3 }
  0x25   : > { %p704_p13 = scmp.lt.s32.totalorder (!%p606_p10), %s2518_s27, 1  ;;  %s3115_s0 = sld [smem:[#allocation19_spill]] (!%p606_p10) }
  0x26   : > { %s3117_s4 = sld [smem:[#allocation22_spill]] (!%p606_p10)  ;;  %s3118_s6 = sld [smem:[#allocation23_spill]] (!%p606_p10) }
  0x27   : > { %s699_s14 = scalar_lea.vmem (!%p606_p10), [#allocation3], %s2710_s29  ;;  %s3119_s15 = sld [smem:[#allocation9_spill]] (!%p606_p10) }
  0x28   : > { %s701_s22 = scalar_select %p700_p12, %s2522_s28, 1 }
  0x29   : > { %s2715_s24 = scalar_select %p704_p13, %s2518_s27, 1 }
  0x2a   : > { %s2161_s23 = sshll.u32 %s701_s22, 3 }
  0x2b   : > { %s703_s19 = scalar_lea.vmem %s3115_s0, %s2161_s23  ;;  %s2218_s28 = sshll.u32 %s2715_s24, 4 }
  0x2c   : > { %s2732_s16 = scalar_lea.vmem %s3117_s4, %s2218_s28  ;;  %s2741_s23 = scalar_lea.vmem %s3118_s6, %s2218_s28 }
  0x2d   : > { %s731_s4 = scalar_lea.vmem %s3066_s9, %s2715_s24  ;;  %s2758_s22 = scalar_lea.vmem %s3067_s10, %s2218_s28 }
  0x2e   : > { %s739_s20 = scalar_lea.vmem %s3068_s11, %s2715_s24  ;;  %s2221_s6 = sshll.u32 %s2715_s24, 6 }
  0x2f   : > { %s747_s17 = scalar_lea.vmem %s3070_s13, %s2715_s24  ;;  %s2772_s30 = scalar_lea.vmem %s3069_s12, %s2221_s6 }
  0x30   : > { %p2170_p0 = scmp.ne.s32.totalorder %s3119_s15, 0 }
  0x31   : > { %v753_v0 = vld [vmem:[%s703_s19] sm:$0xff] (!%p2170_p0)  ;;  %s3120_s27 = sld [smem:[#allocation20_spill]] (!%p2170_p0)  ;;  %vm756_vm0 = vcmask (!%p2170_p0), 261120  }
  0x32   : > { %752 = sbr.rel (%p2170_p0) target bundleno = 59 (0x3b), region = 92 }
  0x37   : > { %v754_v1 = vld [vmem:[%s3120_s27] sm:$0xff] (!%p2170_p0) }
  0x38   : > { %v755_v2 = vadd.f32 (!%p2170_p0), %v754_v1, %v753_v0 }
  0x3a   : > { %757 = vst.msk [vmem:[#allocation2] sm:$0xff] %vm756_vm0, %v755_v2 }
  0x3b PF: > { %vm766_vm1 = vcmask 261120   ;;  %v2408_v10 = vld [vmem:[%s2732_s16] sm:$0xff]   ;;  %v2536_v11 = vmov 0.0   ;;  %vm2537_vm2 = vmmov 0   ;;  %v2409_v12 = vld [vmem:[%s2732_s16 + $0x8] sm:$0xff]   ;;  %s3121_s16 = scalar_lea.vmem %s3059_s2, %s2715_s24  ;;  %s3122_s26 = sld [smem:[#allocation21_spill]]  ;;  %v759_v30 = vlaneseq }
  0x3c   : > { %2251 = vmatprep.subr.bf16.mxu0 %v2536_v11  ;;  %2255 = vmatprep.mubr.msk.bf16.mxu0 %vm2537_vm2, %v2536_v11  ;;  %v2171_v17 = vld [vmem:[%s3121_s16] ss:$0 sm:$0xff]  ;;  %s3124_s15 = scalar_lea.vmem %s3062_s5, %s2715_s24  ;;  %s2538_s3 = smov 112   ;;  %v2540_v31 = vmov 1983009808   ;;  %vm1232_vm3 = vcmask 130048  }
  0x3d   : > { %2252 = vmatpush3.bf16.msra.mxu0 %v2408_v10  ;;  %2271 = vmatprep.subr.bf16.mxu1 %v2536_v11  ;;  %v2173_v23 = vld [vmem:[%s3124_s15] ss:$0 sm:$0xff]  ;;  %s2539_s28 = smov 96   ;;  %v868_v32 = vunpack.c.l.s4 %v2540_v31  ;;  %v2821_v33 = vshrl.u32 %v759_v30, 7  ;;  %v2541_v38 = vmov 1934713408   ;;  %s3125_s16 = scalar_lea.vmem %s3064_s7, %s2715_s24 }
  0x3e   : > { %2253 = vmatprep.subr.bf16.mxu0 %v2536_v11  ;;  %2273 = vmatprep.mubr.msk.bf16.mxu1 %vm2537_vm2, %v2536_v11  ;;  %v899_v39 = vunpack.c.l.s4 %v2541_v38  ;;  %vm1331_vm5 = vcmask 64512   ;;  %s2542_s27 = smov 64   ;;  %vm1359_vm6 = vcmask 1043456   ;;  %s3127_s21 = sld [smem:[#allocation9_spill]] }
  0x3f   : > { %v869_v34 = vunpack.c.0.s8 %v868_v32 }
  0x40   : > { %v900_v41 = vunpack.c.0.s8 %v899_v39 }
  0x41   : > { %v2779_v3 = vld [vmem:[#allocation2] sm:$0xff]  ;;  %2254 = vmatpush3.bf16.msra.mxu0 %v2409_v12  ;;  %s3123_s1 = scalar_lea.vmem %s3122_s26, %s2715_s24  ;;  %v2828_v37 = vsub.s32 %v869_v34, %v2821_v33  ;;  %s3126_s26 = scalar_lea.vmem %s3065_s8, %s2715_s24 }
  0x42   : > { %v767_v4 = vsel %vm766_vm1, %v2779_v3, 0.0  ;;  %2259 = vmatprep.subr.bf16.mxu0 %v2536_v11  ;;  %v2172_v19 = vld [vmem:[%s3123_s1] ss:$0 sm:$0xff]  ;;  %v2838_v49 = vsub.s32 %v900_v41, %v2821_v33 }
  0x43   : > { %768 = vadd.xlane.f32.xlu0 %v767_v4 }
  0x44   : > { %p2208_p1 = scmp.ne.s32.totalorder %s3127_s21, 1 }
  0x45   : > { %s3128_s15 = sld [smem:[#allocation26_spill]] (!%p2208_p1)  ;;  %vm2545_vm7 = vmmov (!%p2208_p1), 0   ;;  %s3129_s6 = sld [smem:[#allocation24_spill]] (!%p2208_p1) }
  0x46   : > { %s3130_s18 = sld [smem:[#allocation25_spill]] (!%p2208_p1) }
  0xd0   : > { %v769_v5 = vpop.xlane.xlu0 %768 }
  0xd1   : > { %v771_v6 = vmul.f32 0.03125, %v769_v5 }
  0xd3   : > { %v772_v7 = vsub.f32 %v2779_v3, %v771_v6 }
  0xd5   : > { %v773_v8 = vmul.f32 %v772_v7, %v772_v7 }
  0xd7   : > { %v774_v9 = vsel %vm766_vm1, %v773_v8, 0.0 }
  0xd8   : > { %775 = vadd.xlane.f32.xlu0 %v774_v9 }
 0x165   : > { %v776_v13 = vpop.xlane.xlu0 %775 }
 0x166   : > { %v777_v14 = vmul.f32 0.03125, %v776_v13 }
 0x168   : > { %v778_v15 = vadd.f32 1e-05, %v777_v14 }
 0x16a   : > { %2422 = vrsqrt.f32 %v778_v15 }
 0x174   : > { %v2423_v16 = vpop.eup %2422 }
 0x175   : > { %v780_v18 = vmul.f32 %v2423_v16, %v772_v7 }
 0x177   : > { %v787_v20 = vmul.f32 %v2171_v17, %v780_v18 }
 0x179   : > { %v794_v21 = vadd.f32 %v2172_v19, %v787_v20 }
 0x17b   : > { %v795_v22 = vpack.c.bf16 %v794_v21, %v794_v21 }
 0x17d   : > { %2256 = vmatmul.mubr.msk.bf16.vlgmr.msra.gmra.mrb[0].mxu0 %vm766_vm1, %v795_v22 }
 0x17e   : > { %2261 = vmatprep.mubr.msk.bf16.mxu0 %vm2537_vm2, %v2536_v11 }
 0x250   : > { %v856_v24 = vpop.f32.mrb[0].mxu0 }
 0x251   : > { %v2813_v25 = vadd.f32 %v2173_v23, %v856_v24  ;;  %v2257_v26 = vpop.f32.mrb[1].mxu0 }
 0x252   : > { %v859_v27 = vpop.f32.mrb[2].mxu0 }
 0x253   : > { %863 = vrot.lane.b32.xlu1 %v2813_v25, %s2538_s3  ;;  %v2258_v28 = vpop.f32.mrb[3].mxu0  ;;  %v866_v36 = vcombine.high %v2813_v25, %v2536_v11  ;;  %v873_v45 = vrot.slane %v2813_v25, %v2828_v37 }
 0x255   : > { %v880_v42 = vrot.slane %v866_v36, %v2828_v37 }
 0x257   : > { %984 = vrot.lane.b32.xlu1 %v2813_v25, %s2539_s28 }
 0x2c5   : > { %v2817_v29 = vpop.permute.xlu1 %863 }
 0x2c6   : > { %986 = vrot.lane.b32.xlu0 %v2817_v29, %s2539_s28  ;;  %v881_v35 = vcombine.high %v2817_v29, %v2536_v11  ;;  %v888_v43 = vrot.slane %v2817_v29, %v2828_v37 }
 0x2c8   : > { %v895_v40 = vrot.slane %v881_v35, %v2828_v37  ;;  %v896_v50 = vcombine.low %v873_v45, %v888_v43  ;;  %v897_v51 = vcombine.high %v873_v45, %v888_v43 }
 0x2c9   : > { %v985_v44 = vpop.permute.xlu1 %984 }
 0x2ca   : > { %v912_v46 = vcombine.low %v880_v42, %v895_v40  ;;  %v913_v47 = vcombine.high %v880_v42, %v895_v40  ;;  %v990_v48 = vcombine.high %v985_v44, %v2536_v11  ;;  %v997_v53 = vrot.slane %v985_v44, %v2828_v37 }
 0x2cb   : > { %v904_v62 = vrot.slane %v896_v50, %v2838_v49  ;;  %v911_v63 = vrot.slane %v897_v51, %v2838_v49 }
 0x2cc   : > { %v920_v56 = vrot.slane %v912_v46, %v2838_v49  ;;  %v927_v57 = vrot.slane %v913_v47, %v2838_v49  ;;  %v1004_v58 = vrot.slane %v990_v48, %v2828_v37  ;;  %v762_v47 = vand.u32 127, %v759_v30 }
 0x2cd   : > { %v932_v12 = vcombine.low %v904_v62, %v911_v63  ;;  %v2177_v13 = vcombine.high %v904_v62, %v911_v63 }
 0x2ce   : > { %v948_v5 = vcombine.low %v920_v56, %v927_v57  ;;  %v2178_v6 = vcombine.high %v920_v56, %v927_v57  ;;  %vm763_vm4 = vcmp.le.s32.totalorder %v762_v47, %v2821_v33 }
 0x2cf   : > { %v939_v23 = vrot.slane %v932_v12, %v2828_v37  ;;  %v947_v24 = vrot.slane %v2177_v13, %v2828_v37 }
 0x2d0   : > { %v955_v18 = vrot.slane %v948_v5, %v2828_v37  ;;  %v963_v19 = vrot.slane %v2178_v6, %v2828_v37 }
 0x2d1   : > { %v964_v32 = vcombine.low %v939_v23, %v947_v24 }
 0x2d2   : > { %v972_v31 = vcombine.low %v955_v18, %v963_v19 }
 0x2d3   : > { %v971_v39 = vrot.slane %v964_v32, %v2838_v49 }
 0x2d4   : > { %v979_v36 = vrot.slane %v972_v31, %v2838_v49 }
 0x2d6   : > { %v980_v41 = vcombine.low %v971_v39, %v979_v36  ;;  %v981_v45 = vcombine.high %v971_v39, %v979_v36 }
 0x2d8   : > { %v982_v43 = vpack.c.bf16 %v980_v41, %v980_v41  ;;  %v983_v46 = vpack.c.bf16 %v981_v45, %v981_v45 }
 0x338   : > { %v987_v52 = vpop.permute.xlu0 %986 }
 0x339   : > { %v1005_v54 = vcombine.high %v987_v52, %v2536_v11  ;;  %v1012_v55 = vrot.slane %v987_v52, %v2828_v37 }
 0x33b   : > { %v1019_v59 = vrot.slane %v1005_v54, %v2828_v37  ;;  %v1020_v60 = vcombine.low %v997_v53, %v1012_v55  ;;  %v1021_v61 = vcombine.high %v997_v53, %v1012_v55 }
 0x33d   : > { %v1028_v0 = vrot.slane %v1020_v60, %v2838_v49  ;;  %v1035_v1 = vrot.slane %v1021_v61, %v2838_v49  ;;  %v1036_v2 = vcombine.low %v1004_v58, %v1019_v59  ;;  %v1037_v4 = vcombine.high %v1004_v58, %v1019_v59 }
 0x33f   : > { %v1044_v7 = vrot.slane %v1036_v2, %v2838_v49  ;;  %v1051_v8 = vrot.slane %v1037_v4, %v2838_v49  ;;  %v1056_v9 = vcombine.low %v1028_v0, %v1035_v1  ;;  %v2179_v10 = vcombine.high %v1028_v0, %v1035_v1 }
 0x341   : > { %v1063_v14 = vrot.slane %v1056_v9, %v2828_v37  ;;  %v1071_v15 = vrot.slane %v2179_v10, %v2828_v37  ;;  %v1072_v16 = vcombine.low %v1044_v7, %v1051_v8  ;;  %v2180_v17 = vcombine.high %v1044_v7, %v1051_v8 }
 0x343   : > { %v1079_v20 = vrot.slane %v1072_v16, %v2828_v37  ;;  %v1087_v21 = vrot.slane %v2180_v17, %v2828_v37  ;;  %v1088_v22 = vcombine.low %v1063_v14, %v1071_v15 }
 0x345   : > { %v1096_v26 = vcombine.low %v1079_v20, %v1087_v21  ;;  %v1095_v27 = vrot.slane %v1088_v22, %v2838_v49 }
 0x347   : > { %v1103_v28 = vrot.slane %v1096_v26, %v2838_v49 }
 0x349   : > { %v1104_v34 = vcombine.low %v1095_v27, %v1103_v28  ;;  %v1105_v40 = vcombine.high %v1095_v27, %v1103_v28 }
 0x34b   : > { %v1106_v35 = vpack.c.bf16 %v1104_v34, %v1104_v34  ;;  %v1107_v42 = vpack.c.bf16 %v1105_v40, %v1105_v40 }
 0x34d   : > { %v1237_v38 = vsel %vm1232_vm3, %v1106_v35, 0  ;;  %v1283_v44 = vsel %vm1232_vm3, %v1107_v42, 0 }
 0x34e   : > { %2260 = vmatpush3.bf16.xpose.msra.mxu0 %v1237_v38 }
 0x34f   : > { %2265 = vmatprep.subr.bf16.mxu0 %v2536_v11 }
 0x355   : > { %2262 = vmatmul.mubr.msk.bf16.vlgmr.msra.gmra.mrb[4].mxu0 %vm1232_vm3, %v982_v43 }
 0x356   : > { %2266 = vmatpush3.bf16.xpose.msra.mxu0 %v1283_v44  ;;  %2267 = vmatprep.mubr.msk.bf16.mxu0 %vm2537_vm2, %v2536_v11 }
 0x357   : > { %2277 = vmatprep.subr.bf16.mxu0 %v2536_v11 }
 0x35d   : > { %2268 = vmatmul.mubr.msk.bf16.vlgmr.msra.gmra.mrb[8].mxu0 %vm1232_vm3, %v983_v46 }
 0x35e   : > { %2279 = vmatprep.mubr.msk.bf16.mxu0 %vm2537_vm2, %v2536_v11 }
 0x428   : > { %v1273_v48 = vpop.f32.mrb[4].mxu0 }
 0x429   : > { %v1325_v50 = vmul.f32 0.25, %v1273_v48  ;;  %v2263_v51 = vpop.f32.mrb[5].mxu0 }
 0x42a   : > { %v1276_v52 = vpop.f32.mrb[6].mxu0 }
 0x42b   : > { %v2264_v53 = vpop.f32.mrb[7].mxu0  ;;  %v1329_v54 = vsel %vm763_vm4, %v1325_v50, -1e+30 }
 0x42c   : > { %v1332_v55 = vsel %vm1331_vm5, %v1329_v54, -inf }
 0x42d   : > { %1333 = vmax.xlane.f32.xlu1 %v1332_v55  ;;  %v2410_v55 = vld [vmem:[%s2741_s23] sm:$0xff]  }
 0x430   : > { %v1319_v56 = vpop.f32.mrb[8].mxu0 }
 0x431   : > { %v1326_v57 = vmul.f32 0.25, %v1319_v56  ;;  %v2269_v58 = vpop.f32.mrb[9].mxu0 }
 0x432   : > { %v1322_v59 = vpop.f32.mrb[10].mxu0 }
 0x433   : > { %v2270_v60 = vpop.f32.mrb[11].mxu0  ;;  %v1330_v61 = vsel %vm763_vm4, %v1326_v57, -1e+30 }
 0x434   : > { %v1335_v30 = vsel %vm1331_vm5, %v1330_v61, -inf }
 0x435   : > { %1336 = vmax.xlane.f32.xlu0 %v1335_v30 }
 0x44b   : > { %1110 = vrot.lane.b32.xlu0 %v2817_v29, %s2542_s27 }
 0x4ba   : > { %v1334_v33 = vpop.xlane.xlu1 %1333 }
 0x4bb   : > { %v1338_v62 = vsub.f32 %v1329_v54, %v1334_v33 }
 0x4bd   : > { %v1340_v63 = vmul.f32 1.442695, %v1338_v62 }
 0x4bf   : > { %2424 = vpow2.f32 %v1340_v63 }
 0x4c2   : > { %v1337_v0 = vpop.xlane.xlu0 %1336 }
 0x4c3   : > { %v1339_v1 = vsub.f32 %v1330_v61, %v1337_v0 }
 0x4c5   : > { %v1342_v2 = vmul.f32 1.442695, %v1339_v1 }
 0x4c6   : > { %v1111_v29 = vpop.permute.xlu0 %1110 }
 0x4c7   : > { %2426 = vpow2.f32 %v1342_v2  ;;  %v1129_v10 = vcombine.high %v1111_v29, %v2536_v11  ;;  %v1136_v13 = vrot.slane %v1111_v29, %v2828_v37 }
 0x4c9   : > { %v2425_v4 = vpop.eup %2424  ;;  %v1143_v16 = vrot.slane %v1129_v10, %v2828_v37  ;;  %v2411_v10 = vld [vmem:[%s2741_s23 + $0x8] sm:$0xff]   ;;  %s2543_s23 = smov 16  }
 0x4ca   : > { %v1344_v5 = vsel %vm1331_vm5, %v2425_v4, 0.0 }
 0x4cb   : > { %1345 = vadd.xlane.f32.xlu1 %v1344_v5 }
 0x4d1   : > { %v2427_v6 = vpop.eup %2426 }
 0x4d2   : > { %v1347_v7 = vsel %vm1331_vm5, %v2427_v6, 0.0 }
 0x4d3   : > { %1348 = vadd.xlane.f32.xlu1 %v1347_v7 }
 0x4e4   : > { %1108 = vrot.lane.b32.xlu1 %v2813_v25, %s2542_s27 }
 0x558   : > { %v1346_v8 = vpop.xlane.xlu1 %1345 }
 0x559   : > { %2428 = vrcp.f32 %v1346_v8 }
 0x560   : > { %v1349_v9 = vpop.xlane.xlu1 %1348 }
 0x561   : > { %2430 = vrcp.f32 %v1349_v9 }
 0x563   : > { %v2429_v40 = vpop.eup %2428 }
 0x564   : > { %v1109_v12 = vpop.permute.xlu1 %1108  ;;  %v1352_v50 = vmul.f32 %v2429_v40, %v2425_v4 }
 0x565   : > { %v1114_v14 = vcombine.high %v1109_v12, %v2536_v11  ;;  %v1121_v15 = vrot.slane %v1109_v12, %v2828_v37 }
 0x566   : > { %v1354_v53 = vpack.c.bf16 %v1352_v50, %v1352_v50 }
 0x567   : > { %v1128_v17 = vrot.slane %v1114_v14, %v2828_v37  ;;  %v1144_v18 = vcombine.low %v1121_v15, %v1136_v13  ;;  %v1145_v19 = vcombine.high %v1121_v15, %v1136_v13 }
 0x569   : > { %v1152_v25 = vrot.slane %v1144_v18, %v2838_v49  ;;  %v1159_v20 = vrot.slane %v1145_v19, %v2838_v49  ;;  %v1160_v21 = vcombine.low %v1128_v17, %v1143_v16  ;;  %v1161_v22 = vcombine.high %v1128_v17, %v1143_v16 }
 0x56b   : > { %v1168_v23 = vrot.slane %v1160_v21, %v2838_v49  ;;  %v1175_v24 = vrot.slane %v1161_v22, %v2838_v49  ;;  %v1180_v26 = vcombine.low %v1152_v25, %v1159_v20  ;;  %v2181_v27 = vcombine.high %v1152_v25, %v1159_v20  ;;  %v2431_v43 = vpop.eup %2430 }
 0x56c   : > { %v1353_v46 = vmul.f32 %v2431_v43, %v2427_v6 }
 0x56d   : > { %v1196_v28 = vcombine.low %v1168_v23, %v1175_v24  ;;  %v2182_v31 = vcombine.high %v1168_v23, %v1175_v24  ;;  %v1187_v32 = vrot.slane %v1180_v26, %v2828_v37  ;;  %v1195_v34 = vrot.slane %v2181_v27, %v2828_v37 }
 0x56e   : > { %v1355_v54 = vpack.c.bf16 %v1353_v46, %v1353_v46  ;;  %v2412_v46 = vld [vmem:[%s2758_s22] sm:$0xff]  }
 0x56f   : > { %v1203_v35 = vrot.slane %v1196_v28, %v2828_v37  ;;  %v1211_v36 = vrot.slane %v2182_v31, %v2828_v37  ;;  %v1212_v38 = vcombine.low %v1187_v32, %v1195_v34 }
 0x571   : > { %v1220_v39 = vcombine.low %v1203_v35, %v1211_v36  ;;  %v1219_v41 = vrot.slane %v1212_v38, %v2838_v49 }
 0x573   : > { %v1227_v42 = vrot.slane %v1220_v39, %v2838_v49 }
 0x575   : > { %v1228_v44 = vcombine.low %v1219_v41, %v1227_v42  ;;  %v1229_v45 = vcombine.high %v1219_v41, %v1227_v42 }
 0x577   : > { %v1230_v47 = vpack.c.bf16 %v1228_v44, %v1228_v44  ;;  %v1231_v48 = vpack.c.bf16 %v1229_v45, %v1229_v45 }
 0x579   : > { %v1361_v51 = vsel %vm1359_vm6, %v1230_v47, 0  ;;  %v1407_v52 = vsel %vm1359_vm6, %v1231_v48, 0  ;;  %v2413_v47 = vld [vmem:[%s2758_s22 + $0x8] sm:$0xff]  }
 0x57a   : > { %2272 = vmatpush3.bf16.msra.mxu1 %v1361_v51  ;;  %2278 = vmatpush3.bf16.msra.mxu0 %v1407_v52 }
 0x57b   : > { %2283 = vmatprep.subr.bf16.mxu1 %v2536_v11  ;;  %2291 = vmatprep.subr.bf16.mxu0 %v2536_v11 }
 0x57d   : > { %2274 = vmatmul.mubr.msk.bf16.vlgmr.msra.gmra.mrb[0].mxu1 %vm1331_vm5, %v1354_v53  ;;  %2280 = vmatmul.mubr.msk.bf16.vlgmr.msra.gmra.mrb[12].mxu0 %vm1331_vm5, %v1355_v54  ;;  %v2193_v53 = vld [vmem:[%s3126_s26] ss:$0 sm:$0xff] }
 0x57e   : > { %2287 = vmatprep.mubr.msk.bf16.mxu1 %vm2537_vm2, %v2536_v11  ;;  %2295 = vmatprep.mubr.msk.bf16.mxu0 %vm2537_vm2, %v2536_v11 }
 0x57f   : > { %2284 = vmatpush3.bf16.msra.mxu1 %v2410_v55  ;;  %2292 = vmatpush3.bf16.msra.mxu0 %v2412_v46  ;;  %v2194_v55 = vld [vmem:[%s731_s4] ss:$0 sm:$0xff] }
 0x580   : > { %2285 = vmatprep.subr.bf16.mxu1 %v2536_v11  ;;  %2293 = vmatprep.subr.bf16.mxu0 %v2536_v11 }
 0x583   : > { %2286 = vmatpush3.bf16.msra.mxu1 %v2411_v10  ;;  %2294 = vmatpush3.bf16.msra.mxu0 %v2413_v47 }
 0x584   : > { %2299 = vmatprep.subr.bf16.mxu1 %v2536_v11 }
 0x650   : > { %v1397_v56 = vpop.f32.mrb[0].mxu1  ;;  %v1443_v57 = vpop.f32.mrb[12].mxu0 }
 0x651   : > { %v1449_v58 = vcombine.high %v1397_v56, %v2536_v11  ;;  %v1456_v59 = vrot.slane %v1397_v56, %v2828_v37  ;;  %v1464_v60 = vcombine.high %v1443_v57, %v2536_v11  ;;  %v1471_v61 = vrot.slane %v1443_v57, %v2828_v37  ;;  %v2275_v30 = vpop.f32.mrb[1].mxu1  ;;  %v2281_v33 = vpop.f32.mrb[13].mxu0 }
 0x652   : > { %v1400_v62 = vpop.f32.mrb[2].mxu1  ;;  %v1446_v63 = vpop.f32.mrb[14].mxu0  ;;  %v2418_v30 = vld [vmem:[%s2772_s30 + $0x20] sm:$0xff]   ;;  %v2419_v33 = vld [vmem:[%s2772_s30 + $0x28] sm:$0xff]  }
 0x653   : > { %v1463_v0 = vrot.slane %v1449_v58, %v2828_v37  ;;  %v1478_v1 = vrot.slane %v1464_v60, %v2828_v37  ;;  %v1479_v2 = vcombine.low %v1456_v59, %v1471_v61  ;;  %v1480_v4 = vcombine.high %v1456_v59, %v1471_v61  ;;  %v2276_v5 = vpop.f32.mrb[3].mxu1  ;;  %v2282_v6 = vpop.f32.mrb[15].mxu0  ;;  %v2415_v59 = vld [vmem:[%s2772_s30 + $0x8] sm:$0xff]   ;;  %v2416_v60 = vld [vmem:[%s2772_s30 + $0x10] sm:$0xff]   ;;  %v2417_v61 = vld [vmem:[%s2772_s30 + $0x18] sm:$0xff]  }
 0x654   : > { %v2420_v62 = vld [vmem:[%s2772_s30 + $0x30] sm:$0xff]   ;;  %v2421_v63 = vld [vmem:[%s2772_s30 + $0x38] sm:$0xff]  }
 0x655   : > { %v1487_v7 = vrot.slane %v1479_v2, %v2838_v49  ;;  %v1494_v8 = vrot.slane %v1480_v4, %v2838_v49  ;;  %v1495_v29 = vcombine.low %v1463_v0, %v1478_v1  ;;  %v1496_v9 = vcombine.high %v1463_v0, %v1478_v1  ;;  %v2195_v0 = vld [vmem:[%s739_s20] ss:$0 sm:$0xff] }
 0x657   : > { %v1503_v12 = vrot.slane %v1495_v29, %v2838_v49  ;;  %v1510_v13 = vrot.slane %v1496_v9, %v2838_v49  ;;  %v1515_v14 = vcombine.low %v1487_v7, %v1494_v8  ;;  %v2187_v15 = vcombine.high %v1487_v7, %v1494_v8 }
 0x659   : > { %v1522_v16 = vrot.slane %v1515_v14, %v2828_v37  ;;  %v1530_v17 = vrot.slane %v2187_v15, %v2828_v37  ;;  %v1531_v18 = vcombine.low %v1503_v12, %v1510_v13  ;;  %v2188_v19 = vcombine.high %v1503_v12, %v1510_v13 }
 0x65b   : > { %v1538_v25 = vrot.slane %v1531_v18, %v2828_v37  ;;  %v1546_v20 = vrot.slane %v2188_v19, %v2828_v37  ;;  %v1547_v21 = vcombine.low %v1522_v16, %v1530_v17  ;;  %v2189_v37 = vld [vmem:[%s3125_s16] ss:$0 sm:$0xff] }
 0x65c   : > { %v2199_v16 = vld [vmem:[%s747_s17] ss:$0 sm:$0xff] }
 0x65d   : > { %v1555_v22 = vcombine.low %v1538_v25, %v1546_v20  ;;  %v1554_v23 = vrot.slane %v1547_v21, %v2838_v49 }
 0x65f   : > { %v1562_v24 = vrot.slane %v1555_v22, %v2838_v49 }
 0x661   : > { %v1564_v26 = vcombine.high %v1554_v23, %v1562_v24  ;;  %v1563_v27 = vcombine.low %v1554_v23, %v1562_v24 }
 0x663   : > { %1566 = vrot.lane.b32.xlu1 %v1564_v26, %s2543_s23 }
 0x6d5   : > { %v1567_v28 = vpop.permute.xlu1 %1566 }
 0x6d6   : > { %v1569_v31 = vsel %vm1232_vm3, %v1563_v27, %v1567_v28 }
 0x6d7   : > { %v1570_v32 = vpack.c.bf16 %v1569_v31, %v1569_v31  ;;  %v2436_v31 = vld [vmem:[%s3128_s15] sm:$0xff] (!%p2208_p1)  }
 0x6d9   : > { %2288 = vmatmul.mubr.msk.bf16.vlgmr.msra.gmra.mrb[4].mxu1 %vm766_vm1, %v1570_v32  ;;  %v2544_v32 = vmov (!%p2208_p1), 0.0  }
 0x6da   : > { %2315 = vmatprep.mubr.msk.bf16.mxu1 %vm2537_vm2, %v2536_v11  ;;  %2319 = vmatprep.subr.bf16.mxu0 (!%p2208_p1), %v2544_v32 }
 0x7ac   : > { %v1631_v49 = vpop.f32.mrb[4].mxu1 }
 0x7ad   : > { %v1632_v34 = vadd.f32 %v2189_v37, %v1631_v49  ;;  %v2289_v35 = vpop.f32.mrb[5].mxu1  ;;  %v2437_v37 = vld [vmem:[%s3128_s15 + $0x8] sm:$0xff] (!%p2208_p1)  }
 0x7ae   : > { %v1634_v36 = vpop.f32.mrb[6].mxu1 }
 0x7af   : > { %v2937_v38 = vadd.f32 %v1632_v34, %v2779_v3  ;;  %v2290_v39 = vpop.f32.mrb[7].mxu1  ;;  %v2414_v3 = vld [vmem:[%s2772_s30] sm:$0xff]  }
 0x7b0   : > { %2300 = vmatpush3.bf16.msra.mxu1 %v2414_v3 }
 0x7b1   : > { %v1640_v40 = vsel %vm766_vm1, %v2937_v38, 0.0  ;;  %2301 = vmatprep.subr.bf16.mxu1 %v2536_v11 }
 0x7b2   : > { %1641 = vadd.xlane.f32.xlu1 %v1640_v40  ;;  %v2210_v40 = vld [vmem:[%s3130_s18] ss:$0 sm:$0xff] (!%p2208_p1) }
 0x7b4   : > { %2302 = vmatpush3.bf16.msra.mxu1 %v2415_v59 }
 0x7b5   : > { %2303 = vmatprep.subr.bf16.mxu1 %v2536_v11 }
 0x7b8   : > { %2304 = vmatpush3.bf16.msra.mxu1 %v2416_v60 }
 0x7b9   : > { %2305 = vmatprep.subr.bf16.mxu1 %v2536_v11 }
 0x7bc   : > { %2306 = vmatpush3.bf16.msra.mxu1 %v2417_v61 }
 0x7bd   : > { %2307 = vmatprep.subr.bf16.mxu1 %v2536_v11 }
 0x7c0   : > { %2308 = vmatpush3.bf16.msra.mxu1 %v2418_v30 }
 0x7c1   : > { %2309 = vmatprep.subr.bf16.mxu1 %v2536_v11 }
 0x7c4   : > { %2310 = vmatpush3.bf16.msra.mxu1 %v2419_v33 }
 0x7c5   : > { %2311 = vmatprep.subr.bf16.mxu1 %v2536_v11 }
 0x7c8   : > { %2312 = vmatpush3.bf16.msra.mxu1 %v2420_v62 }
 0x7c9   : > { %2313 = vmatprep.subr.bf16.mxu1 %v2536_v11 }
 0x7cc   : > { %2314 = vmatpush3.bf16.msra.mxu1 %v2421_v63 }
 0x83f   : > { %v1642_v41 = vpop.xlane.xlu1 %1641 }
 0x840   : > { %v1643_v42 = vmul.f32 0.03125, %v1642_v41 }
 0x842   : > { %v1644_v43 = vsub.f32 %v2937_v38, %v1643_v42 }
 0x844   : > { %v1645_v44 = vmul.f32 %v1644_v43, %v1644_v43 }
 0x846   : > { %v1646_v45 = vsel %vm766_vm1, %v1645_v44, 0.0 }
 0x847   : > { %1647 = vadd.xlane.f32.xlu0 %v1646_v45 }
 0x8d4   : > { %v1648_v48 = vpop.xlane.xlu0 %1647 }
 0x8d5   : > { %v1649_v50 = vmul.f32 0.03125, %v1648_v48 }
 0x8d7   : > { %v1650_v51 = vadd.f32 1e-05, %v1649_v50 }
 0x8d9   : > { %2432 = vrsqrt.f32 %v1650_v51 }
 0x8e3   : > { %v2433_v52 = vpop.eup %2432 }
 0x8e4   : > { %v1652_v54 = vmul.f32 %v2433_v52, %v1644_v43 }
 0x8e6   : > { %v1659_v56 = vmul.f32 %v2193_v53, %v1652_v54 }
 0x8e8   : > { %v1666_v57 = vadd.f32 %v2194_v55, %v1659_v56 }
 0x8ea   : > { %v1667_v58 = vpack.c.bf16 %v1666_v57, %v1666_v57 }
 0x8ec   : > { %2296 = vmatmul.mubr.msk.bf16.vlgmr.msra.gmra.mrb[16].mxu0 %vm766_vm1, %v1667_v58 }
 0x8ed   : > { %2323 = vmatprep.mubr.msk.bf16.mxu0 (!%p2208_p1), %vm2545_vm7, %v2544_v32  ;;  %2320 = vmatpush3.bf16.msra.mxu0 (!%p2208_p1), %v2436_v31 }
 0x8ee   : > { %2321 = vmatprep.subr.bf16.mxu0 (!%p2208_p1), %v2544_v32 }
 0x8f1   : > { %2322 = vmatpush3.bf16.msra.mxu0 (!%p2208_p1), %v2437_v37 }
 0x9bf   : > { %v1728_v1 = vpop.f32.mrb[16].mxu0 }
 0x9c0   : > { %v1729_v2 = vadd.f32 %v2195_v0, %v1728_v1  ;;  %v2297_v4 = vpop.f32.mrb[17].mxu0 }
 0x9c1   : > { %v1731_v5 = vpop.f32.mrb[18].mxu0 }
 0x9c2   : > { %v1735_v6 = vmul.f32 0.044715, %v1729_v2  ;;  %v2298_v7 = vpop.f32.mrb[19].mxu0  ;;  %v1734_v11 = vmul.f32 0.5, %v1729_v2 }
 0x9c4   : > { %v1736_v8 = vmul.f32 %v1735_v6, %v1729_v2 }
 0x9c6   : > { %v1737_v29 = vmul.f32 %v1736_v8, %v1729_v2 }
 0x9c8   : > { %v1738_v9 = vadd.f32 %v1737_v29, %v1729_v2 }
 0x9ca   : > { %v1739_v10 = vmul.f32 0.7978846, %v1738_v9 }
 0x9cc   : > { %2434 = vtanh.f32 %v1739_v10 }
 0x9d6   : > { %v2435_v12 = vpop.eup %2434 }
 0x9d7   : > { %v1741_v13 = vadd.f32 1.0, %v2435_v12 }
 0x9d9   : > { %v1742_v14 = vmul.f32 %v1741_v13, %v1734_v11 }
 0x9db   : > { %v1743_v15 = vpack.c.bf16 %v1742_v14, %v1742_v14 }
 0x9dd   : > { %2316 = vmatmul.mubr.bf16.vlgmr.msra.gmra.mrb[8].mxu1 %v1743_v15 }
 0xaaf   : > { %1860 = sbr.rel (%p2208_p1) target bundleno = 3271 (0xcc7), region = 96 }
 0xab0   : > { %v1849_v17 = vpop.f32.mrb[8].mxu1 }
 0xab1   : > { %v1850_v18 = vadd.f32 %v2199_v16, %v1849_v17  ;;  %v2317_v19 = vpop.f32.mrb[9].mxu1 }
 0xab2   : > { %v1852_v25 = vpop.f32.mrb[10].mxu1 }
 0xab3   : > { %v1855_v20 = vadd.f32 %v1850_v18, %v2937_v38  ;;  %v2318_v21 = vpop.f32.mrb[11].mxu1  ;;  %v2209_v38 = vld [vmem:[%s3129_s6] ss:$0 sm:$0xff] (!%p2208_p1) }
 0xab5   : > { %1856 = vst.msk [vmem:[#allocation2] sm:$0xff] %vm766_vm1, %v1855_v20  ;;  %v1863_v22 = vsel (!%p2208_p1), %vm766_vm1, %v1855_v20, 0.0 }
 0xab6   : > { %1864 = vadd.xlane.f32.xlu0 %v1863_v22 }
 0xb43   : > { %v1865_v23 = vpop.xlane.xlu0 %1864 }
 0xb44   : > { %v1866_v24 = vmul.f32 0.03125, %v1865_v23 }
 0xb46   : > { %v1867_v26 = vsub.f32 %v1855_v20, %v1866_v24 }
 0xb48   : > { %v1868_v27 = vmul.f32 %v1867_v26, %v1867_v26 }
 0xb4a   : > { %v1869_v28 = vsel %vm766_vm1, %v1868_v27, 0.0 }
 0xb4b   : > { %1870 = vadd.xlane.f32.xlu0 %v1869_v28 }
 0xbd8   : > { %v1871_v49 = vpop.xlane.xlu0 %1870 }
 0xbd9   : > { %v1872_v34 = vmul.f32 0.03125, %v1871_v49 }
 0xbdb   : > { %v1873_v35 = vadd.f32 1e-05, %v1872_v34 }
 0xbdd   : > { %2438 = vrsqrt.f32 %v1873_v35 }
 0xbe7   : > { %v2439_v36 = vpop.eup %2438 }
 0xbe8   : > { %v1875_v39 = vmul.f32 %v2439_v36, %v1867_v26 }
 0xbea   : > { %v1882_v41 = vmul.f32 %v2209_v38, %v1875_v39 }
 0xbec   : > { %v1889_v42 = vadd.f32 %v2210_v40, %v1882_v41 }
 0xbee   : > { %v1890_v43 = vpack.c.bf16 %v1889_v42, %v1889_v42 }
 0xbf0   : > { %2324 = vmatmul.mubr.msk.bf16.vlgmr.msra.gmra.mrb[0].mxu0 %vm766_vm1, %v1890_v43 }
 0xcc3   : > { %v1944_v44 = vpop.f32.mrb[0].mxu0 }
 0xcc4   : > { %1950 = vst [vmem:[%s699_s14] sm:$0xff] %v1944_v44  ;;  %v2325_v45 = vpop.f32.mrb[1].mxu0 }
 0xcc5   : > { %v1947_v46 = vpop.f32.mrb[2].mxu0 }
 0xcc6   : > { %v2326_v47 = vpop.f32.mrb[3].mxu0 }
 0xcc7 PF: > { %s3131_s0 = sld [smem:[#allocation10_spill]]  ;;  %s3132_s26 = sld [smem:[#allocation7_spill]] }
 0xcc8   : > { %s3134_s30 = sld [smem:[#allocation27_spill]]  ;;  %s1965_s24 = sshll.u32 %s699_s14, 4  ;;  %s1966_s24 = int_to_ptr.vmem [resolvable:$true] %s1965_s24 }
 0xcc9   : > { %s2440_s28 = scalar_lea.vmem %s1966_s24, 128  ;;  %s2546_s27 = smov [#allocation3]  }
 0xcca   : > { %p2441_p2 = scmp.ne.s32.totalorder %s1966_s24, %s2440_s28  ;;  %s2444_s23 = sshll.u32 %s2546_s27, 4  ;;  %s2445_s23 = int_to_ptr.vmem [resolvable:$false] %s2444_s23 }
 0xccb   : > { %s2446_s6 = scalar_lea.vmem %s2445_s23, 256  ;;  %p2447_p6 = scmp.lt.s32.totalorder %s1966_s24, %s2445_s23 }
 0xccc   : > { %p2442_p4 = pnand %p2441_p2, %p2686_p3  ;;  %p2448_p7 = scmp.lt.s32.totalorder %s2446_s6, %s2440_s28 }
 0xccd   : > { %s2215_s1 = sshll.u32 %s3131_s0, 7  ;;  %s3136_s17 = sand.u32 1, %s3132_s26  }
 0xcce   : > { %s3135_s20 = smov %s3134_s30  ;;  %s3006_s21 = scalar_lea.hbm %s3134_s30, %s2215_s1 }
 0xccf   : > { %s1952_s3 = scalar_lea.sflag [#allocation4], %s3136_s17  ;;  %p2443_p5 = pneg %p2442_p4 }
 0xcd0   : > { %p2449_p8 = por %p2448_p7, %p2447_p6 }
 0xcd2   : > { %p2450_p10 = pnand %p2449_p8, %p2443_p5 }
 0xcd4   : > { %2453 = shalt.err (!%p2450_p10)
}
 0xcd5   : > { %s2454_s29 = scalar_lea.hbm %s3006_s21, 128  ;;  %s2458_s16 = scalar_lea.hbm %s3135_s20, 256 }
 0xcd6   : > { %p2455_p11 = scmp.ne.s32.totalorder %s3006_s21, %s2454_s29  ;;  %p2459_p0 = scmp.lt.u32.totalorder %s3006_s21, %s3135_s20 }
 0xcd7   : > { %p2460_p1 = scmp.lt.u32.totalorder %s2458_s16, %s2454_s29  ;;  %p2462_p4 = scmp.lt.u32.totalorder %s2454_s29, %s3006_s21 }
 0xcd8   : > { %p2456_p12 = pnand %p2455_p11, %p2686_p3 }
 0xcd9   : > { %p2461_p2 = por %p2460_p1, %p2459_p0 }
 0xcda   : > { %p2457_p13 = pneg %p2456_p12 }
 0xcdb   : > { %p2463_p5 = por %p2462_p4, %p2461_p2 }
 0xcdd   : > { %p2464_p6 = pnand %p2463_p5, %p2457_p13 }
 0xcdf   : > { %2467 = shalt.err (!%p2464_p6)
}
 0xce0   : > { %2327 = dma.vmem_to_hbm [thread:$0]  (%p2686_p3), %s1966_s24, 128, %s3006_s21, %s1952_s3  }
 0xce1 PF: > { %s3137_s26 = sld [smem:[#allocation13_spill]]  ;;  %s3138_s1 = sld [smem:[#allocation6_spill]] }
 0xce7   : > { %p2333_p7 = scmp.ge.s32.totalorder %s3137_s26, 2  ;;  %s1977_s25 = sand.u32 1, %s3138_s1  }
 0xce8   : > { %s1978_s30 = scalar_lea.sflag [#allocation4], %s1977_s25 }
 0xce9   : > { %p2330_p8 = pnand %p2333_p7, %p2696_p9 }
 0xceb   : > { %2501 = dma.done.wait (!%p2330_p8), %s1978_s30, 128  }
 0xcec   : > { %2503 = vsyncadd (!%p2330_p8), %s1978_s30, 4294967168  ;;  %s30_s30 = sadd.s32 1, %s3137_s26   ;;  %s3140_s24 = sld [smem:[#allocation7_spill]] }
 0xced   : > { %p27_p10 = scmp.ge.s32.totalorder %s30_s30, 6   ;;  %s3141_s25 = sld [smem:[#allocation8_spill]] }
 0xcee   : > { %s3142_s26 = sld [smem:[#allocation18_spill]]  ;;  %s3143_s27 = sld [smem:[#allocation11_spill]] }
 0xcef   : > { %s3144_s28 = sld [smem:[#allocation12_spill]]  ;;  %s3145_s29 = sld [smem:[#allocation14_spill]] }
 0xcf0   : > { %s3146_s0 = sld [smem:[#allocation16_spill]]  ;;  %29 = sbr.rel (!%p27_p10) target bundleno = 15 (0xf), region = 167 }
 0xcf7   :  { %1983 = vsyncpa [#allocation4], 1 }
 0xcf8   :  { %1985 = vsyncpa [#allocation4 + $0x1], 1 }

</bundles_post_ra>
